<compile_context>
chip_gen: v5e
topology: v5e:2x2
jax: 0.10.0
libtpu: 0.0.40
codegen_flags: <defaults>
</compile_context>

<pallas_src>
import functools

import jax
import jax.numpy as jnp
from jax.experimental import pallas as pl
from jax.experimental.pallas import tpu as pltpu


def _r8(n):
    return ((n + 7) // 8) * 8


# --------------------------- parameter init / packing ------------------------

def init_params(key, dim_in):
    """PyTorch-Linear-style init; weights stored as (in_features, out_features)."""
    dim_z = dim_in + 2
    dim_as = dim_z * 2

    def linear(k, fan_in, fan_out):
        kw, kb = jax.random.split(k)
        bound = 1.0 / float(fan_in) ** 0.5
        w = jax.random.uniform(kw, (fan_in, fan_out), jnp.float32, -bound, bound)
        b = jax.random.uniform(kb, (fan_out,), jnp.float32, -bound, bound)
        return w, b

    keys = jax.random.split(key, 7)
    return {
        "fc1_x":  linear(keys[0], dim_z, dim_as),
        "fc2_x":  linear(keys[1], dim_as, dim_as),
        "fc1_y":  linear(keys[2], dim_z, dim_as),
        "fc1_xy": linear(keys[3], dim_as * 2, dim_as),
        "fc2_xy": linear(keys[4], dim_as, dim_as),
        "fc3_xy": linear(keys[5], dim_as, dim_as),
        "fc4_xy": linear(keys[6], dim_as, 2),
    }


def pack_params(raw, dim_in):
    """Pack all layers into one lane-dense (R, P) weight slab + one (8, P) bias slab.

    The fc1_xy concat-split is done here, once. Hidden width is zero-padded to
    P (multiple of 128) lanes; the cat(X, coord) input width is zero-padded to an
    8-aligned dim_zp. All padded rows/cols are zero so the math is exact
    (relu(0) = tanh(0) = 0).
    """
    dim_z = dim_in + 2
    dim_as = 2 * dim_z
    dim_zp = _r8(dim_z)                      # sublane-aligned input width
    P = pl.cdiv(dim_as, 128) * 128           # lane-padded hidden width (>= dim_as)

    # block name -> contraction rows used by the kernel (all 8-aligned)
    blocks = [("w1x", dim_zp), ("w2x", P),
              ("w1y", dim_zp),
              ("w1xy_a", P), ("w1xy_b", P),
              ("w2xy", P), ("w3xy", P), ("w4xy", P)]
    offs, cur = {}, 0
    for name, rows in blocks:
        offs[name] = cur
        cur += rows
    R = cur

    W = jnp.zeros((R, P), jnp.float32)
    B = jnp.zeros((8, P), jnp.float32)

    def put(Wacc, name, blk):
        blk = blk.astype(jnp.float32)
        o = offs[name]
        return Wacc.at[o:o + blk.shape[0], :blk.shape[1]].set(blk)

    w1x, b1x = raw["fc1_x"]
    w2x, b2x = raw["fc2_x"]
    w1y, b1y = raw["fc1_y"]
    w1xy, b1xy = raw["fc1_xy"]
    w2xy, b2xy = raw["fc2_xy"]
    w3xy, b3xy = raw["fc3_xy"]
    w4xy, b4xy = raw["fc4_xy"]

    W = put(W, "w1x", w1x)                # cat(lm_X, lm_Y) input, zero-padded rows
    W = put(W, "w2x", w2x)
    W = put(W, "w1y", w1y)                # cat(tg_X, y) input, zero-padded rows
    W = put(W, "w1xy_a", w1xy[:dim_as])   # cat(x_feature, y_feature) split
    W = put(W, "w1xy_b", w1xy[dim_as:])
    W = put(W, "w2xy", w2xy)
    W = put(W, "w3xy", w3xy)
    W = put(W, "w4xy", w4xy)

    for i, b in enumerate([b1x, b2x, b1y, b1xy, b2xy, b3xy, b4xy]):
        B = B.at[i, :b.shape[0]].set(b.astype(jnp.float32))

    meta = dict(dim_in=dim_in, dim_z=dim_z, dim_as=dim_as,
                dim_zp=dim_zp, P=P, offs=offs, R=R)
    return W, B, meta


# --------------------------- fused Pallas kernel ------------------------------

def _ebgeo_fused_kernel(dim_zp, P, offs,
                        lmz_ref, tgz_ref, w_ref, b_ref,
                        out_ref, xc_ref):
    dot = functools.partial(jnp.dot, preferred_element_type=jnp.float32,
                            precision=jax.lax.Precision.HIGHEST)

    def wblk(name, rows):
        o = offs[name]                      # static, 8-aligned offsets & sizes
        return w_ref[o:o + rows, :]

    # ---- landmark feature net + mean-pool: computed once (grid step 0) -------
    @pl.when(pl.program_id(0) == 0)
    def _():
        # relu(fc1_x(cat(lm_X, lm_Y)))  -> relu(fc2_x(.))
        h = jnp.maximum(dot(lmz_ref[...], wblk("w1x", dim_zp)) + b_ref[0:1, :], 0.0)
        x_feat = jnp.maximum(dot(h, wblk("w2x", P)) + b_ref[1:2, :], 0.0)
        x_mean = jnp.mean(x_feat, axis=0, keepdims=True)             # (1, P)
        # Hoisted constant row: x_mean @ W1xy[:dim_as] + b1xy
        xc_ref[0:1, :] = dot(x_mean, wblk("w1xy_a", P)) + b_ref[3:4, :]

    # ---- predictor net on this target-row tile --------------------------------
    y_feat = jnp.tanh(dot(tgz_ref[...], wblk("w1y", dim_zp)) + b_ref[2:3, :])  # (tile, P)
    xy1 = jnp.tanh(xc_ref[0:1, :] + dot(y_feat, wblk("w1xy_b", P)))
    xy2 = jnp.tanh(dot(xy1, wblk("w2xy", P)) + b_ref[4:5, :]) + xy1
    xy3 = jnp.tanh(dot(xy2, wblk("w3xy", P)) + b_ref[5:6, :]) + xy2
    out_ref[...] = dot(xy3, wblk("w4xy", P)) + b_ref[6:7, :]          # lane-dense store


# --------------------------- wrapper -----------------------------------------

def ebgeo_forward(packed, lm_X, lm_Y, tg_X, y, *, row_tile=512):
    W, B, meta = packed
    dim_z, dim_zp, P, offs = meta["dim_z"], meta["dim_zp"], meta["P"], meta["offs"]
    n_lm = lm_X.shape[0]
    n_tg = tg_X.shape[0]

    lm_X = lm_X.astype(jnp.float32)
    lm_Y = lm_Y.astype(jnp.float32)
    tg_X = tg_X.astype(jnp.float32)
    y = y.astype(jnp.float32)
    if y.shape[0] != n_tg:                       # PyTorch: y = y.repeat(tg_X.shape[0], 1)
        y = jnp.tile(y, (n_tg, 1))

    # one-time concat + lane-pad of the "z" inputs (zeros hit zero weight rows -> exact)
    lm_z = jnp.concatenate([lm_X, lm_Y], axis=1)
    tg_z = jnp.concatenate([tg_X, y], axis=1)
    if dim_zp != dim_z:
        lm_z = jnp.pad(lm_z, ((0, 0), (0, dim_zp - dim_z)))
        tg_z = jnp.pad(tg_z, ((0, 0), (0, dim_zp - dim_z)))

    # row tile over targets (multiple of 8); pad target rows to a whole tile
    tile = min(row_tile, max(8, _r8(n_tg)))
    n_pad = pl.cdiv(n_tg, tile) * tile
    if n_pad != n_tg:
        tg_z = jnp.pad(tg_z, ((0, n_pad - n_tg), (0, 0)))

    kernel = functools.partial(_ebgeo_fused_kernel, dim_zp, P, offs)

    out = pl.pallas_call(
        kernel,
        out_shape=jax.ShapeDtypeStruct((n_pad, P), jnp.float32),
        grid_spec=pltpu.PrefetchScalarGridSpec(
            num_scalar_prefetch=0,
            grid=(n_pad // tile,),
            in_specs=[
                pl.BlockSpec((n_lm, dim_zp), lambda i: (0, 0)),   # resident landmarks
                pl.BlockSpec((tile, dim_zp), lambda i: (i, 0)),   # streamed target rows
                pl.BlockSpec(W.shape, lambda i: (0, 0)),          # weight slab (resident)
                pl.BlockSpec(B.shape, lambda i: (0, 0)),          # bias slab   (resident)
            ],
            out_specs=pl.BlockSpec((tile, P), lambda i: (i, 0)),
            scratch_shapes=[pltpu.VMEM((8, P), jnp.float32)],     # hoisted x-mean row
        ),
        compiler_params=pltpu.CompilerParams(
            # "arbitrary": grid step 0 fills the persistent scratch row that later
            # steps read, so the row axis must run sequentially on one core.
            dimension_semantics=("arbitrary",)),
    )(lm_z, tg_z, W, B)

    return out[:n_tg, :2]


# --------------------------- pure-JAX reference -------------------------------

def ebgeo_reference(raw, lm_X, lm_Y, tg_X, y, dim_in):
    hp = jax.lax.Precision.HIGHEST
    w1x, b1x = raw["fc1_x"]
    w2x, b2x = raw["fc2_x"]
    w1y, b1y = raw["fc1_y"]
    w1xy, b1xy = raw["fc1_xy"]
    w2xy, b2xy = raw["fc2_xy"]
    w3xy, b3xy = raw["fc3_xy"]
    w4xy, b4xy = raw["fc4_xy"]

    x = jnp.concatenate([lm_X, lm_Y], axis=1)
    xf = jax.nn.relu(jnp.dot(x, w1x, precision=hp) + b1x)
    xf = jax.nn.relu(jnp.dot(xf, w2x, precision=hp) + b2x)

    n_tg = tg_X.shape[0]
    x_feature = jnp.tile(jnp.mean(xf, axis=0, keepdims=True), (n_tg, 1))
    if y.shape[0] != n_tg:
        y = jnp.tile(y, (n_tg, 1))
    yf = jnp.tanh(jnp.dot(jnp.concatenate([tg_X, y], 1), w1y, precision=hp) + b1y)
    xy0 = jnp.concatenate([x_feature, yf], 1)
    xy1 = jnp.tanh(jnp.dot(xy0, w1xy, precision=hp) + b1xy)
    xy2 = jnp.tanh(jnp.dot(xy1, w2xy, precision=hp) + b2xy) + xy1
    xy3 = jnp.tanh(jnp.dot(xy2, w3xy, precision=hp) + b3xy) + xy2
    return jnp.dot(xy3, w4xy, precision=hp) + b4xy


# ------------------------------- main ----------------------------------------

if __name__ == "__main__":
    key = jax.random.PRNGKey(0)
    dim_in = 4           # -> dim_z = 6, dim_as = 12
    n_lm, n_tg = 8, 8

    kp, k1, k2, k3, k4 = jax.random.split(key, 5)
    raw_params = init_params(kp, dim_in)
    packed = pack_params(raw_params, dim_in)          # one-time packing (not per call)

    lm_X = jax.random.normal(k1, (n_lm, dim_in), jnp.float32)   # landmark features
    lm_Y = jax.random.normal(k2, (n_lm, 2), jnp.float32)        # landmark lat/lon
    tg_X = jax.random.normal(k3, (n_tg, dim_in), jnp.float32)   # target features
    y    = jax.random.normal(k4, (1, 2), jnp.float32)           # candidate location

    score = ebgeo_forward(packed, lm_X, lm_Y, tg_X, y)
    score = jax.block_until_ready(score)

    ref = ebgeo_reference(raw_params, lm_X, lm_Y, tg_X, y, dim_in)
    assert score.shape == (n_tg, 2) and score.dtype == jnp.float32
    assert float(jnp.max(jnp.abs(score - ref))) < 2e-4
    print("KERNEL_OK")
</pallas_src>

<mosaic_0001>
module attributes {stable_mosaic.version = 11 : i64} {
  func.func @_ebgeo_fused_kernel(%arg0: i32, %arg1: memref<8x8xf32, #tpu.memory_space<vmem>>, %arg2: memref<8x8xf32, #tpu.memory_space<vmem>>, %arg3: memref<784x128xf32, #tpu.memory_space<vmem>>, %arg4: memref<8x128xf32, #tpu.memory_space<vmem>>, %arg5: memref<8x128xf32, #tpu.memory_space<vmem>>, %arg6: memref<8x128xf32, #tpu.memory_space<vmem>>) attributes {dimension_semantics = [#tpu.dimension_semantics<arbitrary>], iteration_bounds = array<i64: 1>, scalar_prefetch = 0 : i64, scratch_operands = 1 : i64, tpu.core_type = #tpu.core_type<tc>, window_params = [{pipeline_mode = #tpu.pipeline_mode<synchronous>, transform_indices = @transform_0, window_bounds = array<i64: 8, 8>}, {transform_indices = @transform_1, window_bounds = array<i64: 8, 8>}, {pipeline_mode = #tpu.pipeline_mode<synchronous>, transform_indices = @transform_2, window_bounds = array<i64: 784, 128>}, {pipeline_mode = #tpu.pipeline_mode<synchronous>, transform_indices = @transform_3, window_bounds = array<i64: 8, 128>}, {transform_indices = @transform_4, window_bounds = array<i64: 8, 128>}]} {
    %c0_i32 = arith.constant 0 : i32
    %0 = arith.cmpi eq, %arg0, %c0_i32 : i32
    %1 = arith.extui %0 : i1 to i32
    %c0_i32_0 = arith.constant 0 : i32
    %2 = arith.cmpi ne, %1, %c0_i32_0 : i32
    scf.if %2 {
      %c0_19 = arith.constant 0 : index
      %c0_20 = arith.constant 0 : index
      %36 = vector.load %arg1[%c0_19, %c0_20] : memref<8x8xf32, #tpu.memory_space<vmem>>, vector<8x8xf32>
      %c0_21 = arith.constant 0 : index
      %c0_22 = arith.constant 0 : index
      %37 = vector.load %arg3[%c0_21, %c0_22] : memref<784x128xf32, #tpu.memory_space<vmem>>, vector<8x128xf32>
      %cst_23 = arith.constant dense<0.000000e+00> : vector<8x128xf32>
      %38 = tpu.matmul %36, %37, %cst_23 {dimension_numbers = #tpu.dot_dimension_numbers<[1], [0], [0], [1], [0, 0, 1, 1], [], []>, precision = #tpu.contract_precision<fp32>} : vector<8x8xf32>, vector<8x128xf32>, vector<8x128xf32> -> vector<8x128xf32>
      %c0_24 = arith.constant 0 : index
      %c0_25 = arith.constant 0 : index
      %39 = vector.load %arg4[%c0_24, %c0_25] : memref<8x128xf32, #tpu.memory_space<vmem>>, vector<1x128xf32>
      %40 = vector.broadcast %39 : vector<1x128xf32> to vector<8x128xf32>
      %41 = arith.addf %38, %40 : vector<8x128xf32>
      %cst_26 = arith.constant 0.000000e+00 : f32
      %42 = vector.broadcast %cst_26 : f32 to vector<8x128xf32>
      %43 = arith.maximumf %41, %42 : vector<8x128xf32>
      %c8 = arith.constant 8 : index
      %c0_27 = arith.constant 0 : index
      %44 = vector.load %arg3[%c8, %c0_27] : memref<784x128xf32, #tpu.memory_space<vmem>>, vector<128x128xf32>
      %cst_28 = arith.constant dense<0.000000e+00> : vector<8x128xf32>
      %45 = tpu.matmul %43, %44, %cst_28 {dimension_numbers = #tpu.dot_dimension_numbers<[1], [0], [0], [1], [0, 0, 1, 1], [], []>, precision = #tpu.contract_precision<fp32>} : vector<8x128xf32>, vector<128x128xf32>, vector<8x128xf32> -> vector<8x128xf32>
      %c1 = arith.constant 1 : index
      %c0_29 = arith.constant 0 : index
      %46 = vector.load %arg4[%c1, %c0_29] : memref<8x128xf32, #tpu.memory_space<vmem>>, vector<1x128xf32>
      %47 = vector.broadcast %46 : vector<1x128xf32> to vector<8x128xf32>
      %48 = arith.addf %45, %47 : vector<8x128xf32>
      %cst_30 = arith.constant 0.000000e+00 : f32
      %49 = vector.broadcast %cst_30 : f32 to vector<8x128xf32>
      %50 = arith.maximumf %48, %49 : vector<8x128xf32>
      %cst_31 = arith.constant dense<0.000000e+00> : vector<128xf32>
      %51 = vector.multi_reduction <add>, %50, %cst_31 [0] : vector<8x128xf32> to vector<128xf32>
      %52 = vector.shape_cast %51 : vector<128xf32> to vector<1x128xf32>
      %cst_32 = arith.constant 8.000000e+00 : f32
      %53 = vector.broadcast %cst_32 : f32 to vector<1x128xf32>
      %54 = arith.divf %52, %53 : vector<1x128xf32>
      %c144 = arith.constant 144 : index
      %c0_33 = arith.constant 0 : index
      %55 = vector.load %arg3[%c144, %c0_33] : memref<784x128xf32, #tpu.memory_space<vmem>>, vector<128x128xf32>
      %cst_34 = arith.constant dense<0.000000e+00> : vector<1x128xf32>
      %56 = tpu.matmul %54, %55, %cst_34 {dimension_numbers = #tpu.dot_dimension_numbers<[1], [0], [0], [1], [0, 0, 1, 1], [], []>, precision = #tpu.contract_precision<fp32>} : vector<1x128xf32>, vector<128x128xf32>, vector<1x128xf32> -> vector<1x128xf32>
      %c3 = arith.constant 3 : index
      %c0_35 = arith.constant 0 : index
      %57 = vector.load %arg4[%c3, %c0_35] : memref<8x128xf32, #tpu.memory_space<vmem>>, vector<1x128xf32>
      %58 = arith.addf %56, %57 : vector<1x128xf32>
      %c0_36 = arith.constant 0 : index
      %c0_37 = arith.constant 0 : index
      %59 = vector.load %arg6[%c0_36, %c0_37] : memref<8x128xf32, #tpu.memory_space<vmem>>, vector<1x128xf32>
      tpu.vector_store %arg6[%c0_36, %c0_37], %58 {strides = array<i32>} : memref<8x128xf32, #tpu.memory_space<vmem>>, vector<1x128xf32>,
    } else {
    }
    %c0 = arith.constant 0 : index
    %c0_1 = arith.constant 0 : index
    %3 = vector.load %arg2[%c0, %c0_1] : memref<8x8xf32, #tpu.memory_space<vmem>>, vector<8x8xf32>
    %c136 = arith.constant 136 : index
    %c0_2 = arith.constant 0 : index
    %4 = vector.load %arg3[%c136, %c0_2] : memref<784x128xf32, #tpu.memory_space<vmem>>, vector<8x128xf32>
    %cst = arith.constant dense<0.000000e+00> : vector<8x128xf32>
    %5 = tpu.matmul %3, %4, %cst {dimension_numbers = #tpu.dot_dimension_numbers<[1], [0], [0], [1], [0, 0, 1, 1], [], []>, precision = #tpu.contract_precision<fp32>} : vector<8x8xf32>, vector<8x128xf32>, vector<8x128xf32> -> vector<8x128xf32>
    %c2 = arith.constant 2 : index
    %c0_3 = arith.constant 0 : index
    %6 = vector.load %arg4[%c2, %c0_3] : memref<8x128xf32, #tpu.memory_space<vmem>>, vector<1x128xf32>
    %7 = vector.broadcast %6 : vector<1x128xf32> to vector<8x128xf32>
    %8 = arith.addf %5, %7 : vector<8x128xf32>
    %9 = math.tanh %8 : vector<8x128xf32>
    %c0_4 = arith.constant 0 : index
    %c0_5 = arith.constant 0 : index
    %10 = vector.load %arg6[%c0_4, %c0_5] : memref<8x128xf32, #tpu.memory_space<vmem>>, vector<1x128xf32>
    %c272 = arith.constant 272 : index
    %c0_6 = arith.constant 0 : index
    %11 = vector.load %arg3[%c272, %c0_6] : memref<784x128xf32, #tpu.memory_space<vmem>>, vector<128x128xf32>
    %cst_7 = arith.constant dense<0.000000e+00> : vector<8x128xf32>
    %12 = tpu.matmul %9, %11, %cst_7 {dimension_numbers = #tpu.dot_dimension_numbers<[1], [0], [0], [1], [0, 0, 1, 1], [], []>, precision = #tpu.contract_precision<fp32>} : vector<8x128xf32>, vector<128x128xf32>, vector<8x128xf32> -> vector<8x128xf32>
    %13 = vector.broadcast %10 : vector<1x128xf32> to vector<8x128xf32>
    %14 = arith.addf %13, %12 : vector<8x128xf32>
    %15 = math.tanh %14 : vector<8x128xf32>
    %c400 = arith.constant 400 : index
    %c0_8 = arith.constant 0 : index
    %16 = vector.load %arg3[%c400, %c0_8] : memref<784x128xf32, #tpu.memory_space<vmem>>, vector<128x128xf32>
    %cst_9 = arith.constant dense<0.000000e+00> : vector<8x128xf32>
    %17 = tpu.matmul %15, %16, %cst_9 {dimension_numbers = #tpu.dot_dimension_numbers<[1], [0], [0], [1], [0, 0, 1, 1], [], []>, precision = #tpu.contract_precision<fp32>} : vector<8x128xf32>, vector<128x128xf32>, vector<8x128xf32> -> vector<8x128xf32>
    %c4 = arith.constant 4 : index
    %c0_10 = arith.constant 0 : index
    %18 = vector.load %arg4[%c4, %c0_10] : memref<8x128xf32, #tpu.memory_space<vmem>>, vector<1x128xf32>
    %19 = vector.broadcast %18 : vector<1x128xf32> to vector<8x128xf32>
    %20 = arith.addf %17, %19 : vector<8x128xf32>
    %21 = math.tanh %20 : vector<8x128xf32>
    %22 = arith.addf %21, %15 : vector<8x128xf32>
    %c528 = arith.constant 528 : index
    %c0_11 = arith.constant 0 : index
    %23 = vector.load %arg3[%c528, %c0_11] : memref<784x128xf32, #tpu.memory_space<vmem>>, vector<128x128xf32>
    %cst_12 = arith.constant dense<0.000000e+00> : vector<8x128xf32>
    %24 = tpu.matmul %22, %23, %cst_12 {dimension_numbers = #tpu.dot_dimension_numbers<[1], [0], [0], [1], [0, 0, 1, 1], [], []>, precision = #tpu.contract_precision<fp32>} : vector<8x128xf32>, vector<128x128xf32>, vector<8x128xf32> -> vector<8x128xf32>
    %c5 = arith.constant 5 : index
    %c0_13 = arith.constant 0 : index
    %25 = vector.load %arg4[%c5, %c0_13] : memref<8x128xf32, #tpu.memory_space<vmem>>, vector<1x128xf32>
    %26 = vector.broadcast %25 : vector<1x128xf32> to vector<8x128xf32>
    %27 = arith.addf %24, %26 : vector<8x128xf32>
    %28 = math.tanh %27 : vector<8x128xf32>
    %29 = arith.addf %28, %22 : vector<8x128xf32>
    %c656 = arith.constant 656 : index
    %c0_14 = arith.constant 0 : index
    %30 = vector.load %arg3[%c656, %c0_14] : memref<784x128xf32, #tpu.memory_space<vmem>>, vector<128x128xf32>
    %cst_15 = arith.constant dense<0.000000e+00> : vector<8x128xf32>
    %31 = tpu.matmul %29, %30, %cst_15 {dimension_numbers = #tpu.dot_dimension_numbers<[1], [0], [0], [1], [0, 0, 1, 1], [], []>, precision = #tpu.contract_precision<fp32>} : vector<8x128xf32>, vector<128x128xf32>, vector<8x128xf32> -> vector<8x128xf32>
    %c6 = arith.constant 6 : index
    %c0_16 = arith.constant 0 : index
    %32 = vector.load %arg4[%c6, %c0_16] : memref<8x128xf32, #tpu.memory_space<vmem>>, vector<1x128xf32>
    %33 = vector.broadcast %32 : vector<1x128xf32> to vector<8x128xf32>
    %34 = arith.addf %31, %33 : vector<8x128xf32>
    %c0_17 = arith.constant 0 : index
    %c0_18 = arith.constant 0 : index
    %35 = vector.load %arg5[%c0_17, %c0_18] : memref<8x128xf32, #tpu.memory_space<vmem>>, vector<8x128xf32>
    tpu.vector_store %arg5[%c0_17, %c0_18], %34 {strides = array<i32>} : memref<8x128xf32, #tpu.memory_space<vmem>>, vector<8x128xf32>,
    return
  }
  func.func @transform_0(%arg0: i32) -> (i32, i32) {
    %c0_i32 = arith.constant 0 : i32
    %c0_i32_0 = arith.constant 0 : i32
    %c0_i32_1 = arith.constant 0 : i32
    return %c0_i32, %c0_i32_0 : i32, i32
  }
  func.func @transform_1(%arg0: i32) -> (i32, i32) {
    %c0_i32 = arith.constant 0 : i32
    %c0_i32_0 = arith.constant 0 : i32
    return %arg0, %c0_i32 : i32, i32
  }
  func.func @transform_2(%arg0: i32) -> (i32, i32) {
    %c0_i32 = arith.constant 0 : i32
    %c0_i32_0 = arith.constant 0 : i32
    %c0_i32_1 = arith.constant 0 : i32
    return %c0_i32, %c0_i32_0 : i32, i32
  }
  func.func @transform_3(%arg0: i32) -> (i32, i32) {
    %c0_i32 = arith.constant 0 : i32
    %c0_i32_0 = arith.constant 0 : i32
    %c0_i32_1 = arith.constant 0 : i32
    return %c0_i32, %c0_i32_0 : i32, i32
  }
  func.func @transform_4(%arg0: i32) -> (i32, i32) {
    %c0_i32 = arith.constant 0 : i32
    %c0_i32_0 = arith.constant 0 : i32
    return %arg0, %c0_i32 : i32, i32
  }
}

</mosaic_0001>

<bundles_post_ra>
// kernel: tpu_custom_call.1
= control target key start
LH: loop header
LB: loop body
LE: loop exit
PB: predicated region body
PF: predicated region fallthrough
CT: control target
= control target key end

     0   :  { %9 = vsyncpa [#allocation4], 0  ;;  %s4064_s0 = inlined_call_operand.hbm [shape: f32[8,8], index: 0, kind: input, shape index: {}]   ;;  %s4065_s1 = inlined_call_operand.hbm [shape: f32[8,8], index: 1, kind: input, shape index: {}]   ;;  %s4066_s2 = inlined_call_operand.hbm [shape: f32[784,128], index: 2, kind: input, shape index: {}]   ;;  %s4067_s3 = inlined_call_operand.hbm [shape: f32[8,128], index: 3, kind: input, shape index: {}]   ;;  %s4068_s4 = inlined_call_operand.hbm [shape: f32[8,128], index: 4, kind: output, shape index: {}]  }
   0x1   :  { %10 = vsyncpa [#allocation7], 0 }
   0x2   :  { %11 = vsyncpa [#allocation10], 0  ;;  %s29_s17 = sshll.u32 %s4065_s1, 4  ;;  %s30_s17 = int_to_ptr.hbm [resolvable:$true] %s29_s17 }
   0x3   :  { %12 = vsyncpa [#allocation5], 0  ;;  %s2737_s18 = smov [#allocation6]   ;;  %s18_s22 = sshll.u32 %s4064_s0, 4  ;;  %s19_s22 = int_to_ptr.hbm [resolvable:$true] %s18_s22 }
   0x4   :  { %s31_s19 = sshll.u32 %s2737_s18, 4  ;;  %s2738_s23 = smov [#allocation3]   ;;  %s32_s19 = int_to_ptr.vmem [resolvable:$true] %s31_s19 }
   0x5   :  { %34 = dma.hbm_to_vmem [thread:$0]  %s30_s17, 128, %s32_s19, [#allocation7]  }
   0x6   :  { %s20_s24 = sshll.u32 %s2738_s23, 4  ;;  %s39_s27 = sshll.u32 %s4066_s2, 4  ;;  %s21_s24 = int_to_ptr.vmem [resolvable:$true] %s20_s24  ;;  %s40_s27 = int_to_ptr.hbm [resolvable:$true] %s39_s27 }
   0x7   :  { %23 = dma.hbm_to_vmem [thread:$0]  %s19_s22, 128, %s21_s24, [#allocation4]  }
   0x8   :  { %s2739_s1 = smov [#allocation8]   ;;  %s53_s5 = sshll.u32 %s4067_s3, 4  ;;  %s54_s5 = int_to_ptr.hbm [resolvable:$true] %s53_s5 }
   0x9   :  { %s41_s28 = sshll.u32 %s2739_s1, 4  ;;  %s2740_s6 = smov 128   ;;  %s42_s28 = int_to_ptr.vmem [resolvable:$true] %s41_s28 }
   0xa   :  { %s2741_s0 = smov 8   ;;  %s2742_s7 = smov [#allocation9]  }
   0xb   :  { %47 = dma.hbm_to_vmem [thread:$0]  %s40_s27, 12544, %s42_s28, [#allocation7], %s2740_s6, %s2740_s6, %s2741_s0  }
   0xc   :  { %s55_s8 = sshll.u32 %s2742_s7, 4  ;;  %s56_s8 = int_to_ptr.vmem [resolvable:$true] %s55_s8 }
   0xd   :  { %58 = dma.hbm_to_vmem [thread:$0]  %s54_s5, 128, %s56_s8, [#allocation10]  }
   0xe   :  { %2729 = dma.done.wait [#allocation4], 128  }
   0xf   :  { %2730 = vsyncadd [#allocation4], 4294967168 }
  0x10   :  { %2731 = dma.done.wait [#allocation7], 12672  }
  0x11   :  { %2732 = vsyncadd [#allocation7], 4294954624 }
  0x12   :  { %2733 = dma.done.wait [#allocation10], 128  }
  0x13   :  { %2734 = vsyncadd [#allocation10], 4294967168  ;;  %vm83_vm0 = vcmask 64512   ;;  %v80_v0 = vld [vmem:[#allocation8] sm:$0xff]  ;;  %v79_v1 = vld [vmem:[#allocation3] sm:$0xff]  ;;  %s2744_s2 = smov [#allocation11]  }
  0x14   :  { %v102_v2 = vand.u32 4294901760, %v80_v0  ;;  %v85_v3 = vsel %vm83_vm0, %v79_v1, 0  ;;  %v249_v4 = vld [vmem:[#allocation8 + $0x80] sm:$0xff]  ;;  %v248_v5 = vld [vmem:[#allocation8 + $0x78] sm:$0xff]  ;;  %v247_v6 = vld [vmem:[#allocation8 + $0x70] sm:$0xff]  ;;  %s2570_s3 = sshll.u32 %s2744_s2, 4  ;;  %s2571_s3 = int_to_ptr.vmem [resolvable:$true] %s2570_s3 }
  0x15   :  { %v2783_v7 = vand.u32 4294901760, %v85_v3  ;;  %v2785_v8 = vand.u32 4294901760, %v249_v4  ;;  %v2787_v9 = vand.u32 4294901760, %v248_v5  ;;  %v246_v10 = vld [vmem:[#allocation8 + $0x68] sm:$0xff]  ;;  %v245_v11 = vld [vmem:[#allocation8 + $0x60] sm:$0xff]  ;;  %v2789_v13 = vand.u32 4294901760, %v247_v6 }
  0x16   :  { %v129_v12 = vsub.f32 %v80_v0, %v102_v2  ;;  %103 = vmatpush.msra.mxu0 %v102_v2  ;;  %179 = vmatpush.msra.mxu3 %v102_v2  ;;  %v2791_v14 = vand.u32 4294901760, %v246_v10  ;;  %v2793_v15 = vand.u32 4294901760, %v245_v11  ;;  %v244_v16 = vld [vmem:[#allocation8 + $0x58] sm:$0xff]  ;;  %v243_v31 = vld [vmem:[#allocation8 + $0x50] sm:$0xff]  ;;  %v242_v32 = vld [vmem:[#allocation8 + $0x48] sm:$0xff]  ;;  %s2572_s11 = sshll.u32 %s4068_s4, 4  ;;  %s2573_s11 = int_to_ptr.hbm [resolvable:$true] %s2572_s11 }
  0x17   :  { %v105_v17 = vsub.f32 %v85_v3, %v2783_v7  ;;  %v2797_v18 = vsub.f32 %v249_v4, %v2785_v8  ;;  %v2800_v19 = vsub.f32 %v248_v5, %v2787_v9  ;;  %v2803_v21 = vsub.f32 %v247_v6, %v2789_v13  ;;  %v241_v40 = vld [vmem:[#allocation8 + $0x40] sm:$0xff]  ;;  %v240_v41 = vld [vmem:[#allocation8 + $0x38] sm:$0xff]  ;;  %v239_v44 = vld [vmem:[#allocation8 + $0x30] sm:$0xff] }
  0x18   :  { %156 = vmatpush.msra.mxu2 %v129_v12  ;;  %v130_v20 = vand.u32 4294901760, %v129_v12  ;;  %v2806_v22 = vsub.f32 %v246_v10, %v2791_v14  ;;  %v2809_v23 = vsub.f32 %v245_v11, %v2793_v15  ;;  %v2813_v27 = vand.u32 4294901760, %v244_v16  ;;  %v238_v49 = vld [vmem:[#allocation8 + $0x28] sm:$0xff]  ;;  %v237_v57 = vld [vmem:[#allocation8 + $0x20] sm:$0xff]  ;;  %v236_v3 = vld [vmem:[#allocation8 + $0x18] sm:$0xff] }
  0x19   :  { %159 = vmatmul.f32.vlgmr.msra.gmra.mxu2 %v105_v17  ;;  %v106_v24 = vand.u32 4294901760, %v105_v17  ;;  %v295_v25 = vand.u32 4294901760, %v2797_v18  ;;  %v301_v26 = vand.u32 4294901760, %v2800_v19  ;;  %v307_v29 = vand.u32 4294901760, %v2803_v21 }
  0x1a   :  { %205 = vmatpush.msrb.mxu0 %v130_v20  ;;  %v131_v28 = vsub.f32 %v129_v12, %v130_v20  ;;  %v313_v30 = vand.u32 4294901760, %v2806_v22  ;;  %253 = vmatpush.msrb.mxu2 %v2785_v8  ;;  %v2825_v36 = vsub.f32 %v244_v16, %v2813_v27  ;;  %v319_v39 = vand.u32 4294901760, %v2809_v23  ;;  %v235_v12 = vld [vmem:[#allocation8 + $0x10] sm:$0xff] }
  0x1b   :  { %v107_v33 = vsub.f32 %v105_v17, %v106_v24  ;;  %183 = vmatmul.f32.vlgmr.msra.gmra.mxu3 %v106_v24  ;;  %v296_v34 = vsub.f32 %v2797_v18, %v295_v25  ;;  %v302_v35 = vsub.f32 %v2800_v19, %v301_v26  ;;  %v308_v38 = vsub.f32 %v2803_v21, %v307_v29 }
  0x1c   :  { %v132_v37 = vand.u32 4294901760, %v131_v28  ;;  %255 = vmatpush.msrb.mxu2 %v2787_v9  ;;  %v314_v46 = vsub.f32 %v2806_v22, %v313_v30  ;;  %v325_v47 = vand.u32 4294901760, %v2825_v36  ;;  %v2837_v48 = vand.u32 4294901760, %v243_v31 }
  0x1d   :  { %v108_v42 = vand.u32 4294901760, %v107_v33  ;;  %v297_v43 = vand.u32 4294901760, %v296_v34  ;;  %v303_v45 = vand.u32 4294901760, %v302_v35  ;;  %v2840_v50 = vand.u32 4294901760, %v242_v32 }
  0x1e   :  { %133 = vmatpush.msra.mxu1 %v132_v37  ;;  %257 = vmatpush.msrb.mxu2 %v2789_v13  ;;  %v2842_v51 = vand.u32 4294901760, %v241_v40  ;;  %v2844_v52 = vand.u32 4294901760, %v240_v41  ;;  %v309_v53 = vand.u32 4294901760, %v308_v38  ;;  %v320_v54 = vsub.f32 %v2809_v23, %v319_v39 }
  0x1f   :  { %109 = vmatmul.f32.vlgmr.msra.gmra.mxu0 %v108_v42  ;;  %135 = vmatmul.f32.vlgmr.msra.gmra.mxu1 %v2783_v7  ;;  %v2850_v55 = vsub.f32 %v243_v31, %v2837_v48  ;;  %v2852_v56 = vand.u32 4294901760, %v239_v44  ;;  %v2856_v58 = vsub.f32 %v242_v32, %v2840_v50  ;;  %v2861_v60 = vand.u32 4294901760, %v238_v49  ;;  %v234_v31 = vld [vmem:[#allocation8 + $0x8] sm:$0xff] }
  0x20   :  { %227 = vmatpush.msrb.mxu1 %v102_v2  ;;  %298 = vmatpush.msrb.mxu3 %v297_v43  ;;  %v2859_v59 = vsub.f32 %v241_v40, %v2842_v51  ;;  %v315_v61 = vand.u32 4294901760, %v314_v46  ;;  %v326_v62 = vsub.f32 %v2825_v36, %v325_v47  ;;  %v2869_v0 = vsub.f32 %v240_v41, %v2844_v52 }
  0x21   :  { %259 = vmatpush.msrb.mxu2 %v2791_v14  ;;  %396 = vmatpush.msra.mxu0 %v2797_v18  ;;  %v331_v63 = vand.u32 4294901760, %v2850_v55  ;;  %v337_v1 = vand.u32 4294901760, %v2856_v58  ;;  %v2874_v2 = vand.u32 4294901760, %v237_v57  ;;  %v321_v4 = vand.u32 4294901760, %v320_v54  ;;  %v622_v18 = vld [vmem:[#allocation8 + $0x100] sm:$0xff] }
  0x22   :  { %304 = vmatpush.msrb.mxu3 %v303_v45  ;;  %449 = vmatpush.msra.mxu1 %v2785_v8  ;;  %v343_v6 = vand.u32 4294901760, %v2859_v59  ;;  %v2882_v10 = vsub.f32 %v239_v44, %v2852_v56  ;;  %v2887_v11 = vsub.f32 %v238_v49, %v2861_v60  ;;  %v327_v16 = vand.u32 4294901760, %v326_v62 }
  0x23   :  { %261 = vmatpush.msrb.mxu2 %v2793_v15  ;;  %399 = vmatpush.msra.mxu0 %v2800_v19  ;;  %v332_v5 = vsub.f32 %v2850_v55, %v331_v63  ;;  %v338_v17 = vsub.f32 %v2856_v58, %v337_v1  ;;  %v349_v20 = vand.u32 4294901760, %v2869_v0  ;;  %v2893_v24 = vand.u32 4294901760, %v236_v3  ;;  %v621_v19 = vld [vmem:[#allocation8 + $0xf8] sm:$0xff] }
  0x24   :  { %310 = vmatpush.msrb.mxu3 %v309_v53  ;;  %451 = vmatpush.msra.mxu1 %v2787_v9  ;;  %v2899_v28 = vsub.f32 %v237_v57, %v2874_v2  ;;  %v344_v33 = vsub.f32 %v2859_v59, %v343_v6  ;;  %v355_v34 = vand.u32 4294901760, %v2882_v10  ;;  %v2906_v35 = vand.u32 4294901760, %v235_v12 }
  0x25   :  { %263 = vmatpush.msrb.mxu2 %v2813_v27  ;;  %402 = vmatpush.msra.mxu0 %v2803_v21  ;;  %v333_v32 = vand.u32 4294901760, %v332_v5  ;;  %v361_v37 = vand.u32 4294901760, %v2887_v11  ;;  %v350_v38 = vsub.f32 %v2869_v0, %v349_v20  ;;  %v2916_v40 = vsub.f32 %v236_v3, %v2893_v24 }
  0x26   :  { %316 = vmatpush.msrb.mxu3 %v315_v61  ;;  %453 = vmatpush.msra.mxu1 %v2789_v13  ;;  %v2918_v41 = vand.u32 4294901760, %v234_v31  ;;  %v345_v42 = vand.u32 4294901760, %v344_v33  ;;  %v356_v43 = vsub.f32 %v2882_v10, %v355_v34  ;;  %v367_v44 = vand.u32 4294901760, %v2899_v28 }
  0x27   :  { %207 = vmatmul.f32.vlgmr.msrb.gmra.mxu0 %v2783_v7  ;;  %229 = vmatmul.f32.vlgmr.msrb.gmra.mxu1 %v2783_v7  ;;  %v339_v7 = vand.u32 4294901760, %v338_v17  ;;  %v2928_v45 = vsub.f32 %v235_v12, %v2906_v35  ;;  %v351_v46 = vand.u32 4294901760, %v350_v38  ;;  %v362_v49 = vsub.f32 %v2887_v11, %v361_v37 }
  0x28   :  { %322 = vmatpush.msrb.mxu3 %v321_v4  ;;  %265 = vmatpush.msrb.mxu2 %v2837_v48  ;;  %v373_v53 = vand.u32 4294901760, %v2916_v40  ;;  %v2938_v54 = vsub.f32 %v234_v31, %v2918_v41  ;;  %v357_v57 = vand.u32 4294901760, %v356_v43  ;;  %v368_v61 = vsub.f32 %v2899_v28, %v367_v44 }
  0x29   :  { %405 = vmatpush.msra.mxu0 %v2806_v22  ;;  %455 = vmatpush.msra.mxu1 %v2791_v14  ;;  %v379_v62 = vand.u32 4294901760, %v2928_v45  ;;  %v363_v3 = vand.u32 4294901760, %v362_v49 }
  0x2a   :  { %328 = vmatpush.msrb.mxu3 %v327_v16  ;;  %267 = vmatpush.msrb.mxu2 %v2840_v50  ;;  %v374_v4 = vsub.f32 %v2916_v40, %v373_v53  ;;  %v385_v5 = vand.u32 4294901760, %v2938_v54  ;;  %v369_v12 = vand.u32 4294901760, %v368_v61 }
  0x2b   :  { %408 = vmatpush.msra.mxu0 %v2809_v23  ;;  %457 = vmatpush.msra.mxu1 %v2793_v15  ;;  %v380_v16 = vsub.f32 %v2928_v45, %v379_v62  ;;  %v3027_v23 = vand.u32 4294901760, %v622_v18 }
  0x2c   :  { %334 = vmatpush.msrb.mxu3 %v333_v32  ;;  %269 = vmatpush.msrb.mxu2 %v2842_v51  ;;  %v375_v17 = vand.u32 4294901760, %v374_v4  ;;  %v386_v31 = vsub.f32 %v2938_v54, %v385_v5 }
  0x2d   :  { %411 = vmatpush.msra.mxu0 %v2825_v36  ;;  %459 = vmatpush.msra.mxu1 %v2813_v27  ;;  %v381_v32 = vand.u32 4294901760, %v380_v16 }
  0x2e   :  { %340 = vmatpush.msrb.mxu3 %v339_v7  ;;  %271 = vmatpush.msrb.mxu2 %v2844_v52  ;;  %v387_v33 = vand.u32 4294901760, %v386_v31 }
  0x2f   :  { %414 = vmatpush.msra.mxu0 %v2850_v55  ;;  %461 = vmatpush.msra.mxu1 %v2837_v48 }
  0x30   :  { %346 = vmatpush.msrb.mxu3 %v345_v42  ;;  %273 = vmatpush.msrb.mxu2 %v2852_v56 }
  0x31   :  { %417 = vmatpush.msra.mxu0 %v2856_v58  ;;  %463 = vmatpush.msra.mxu1 %v2840_v50 }
  0x32   :  { %352 = vmatpush.msrb.mxu3 %v351_v46  ;;  %275 = vmatpush.msrb.mxu2 %v2861_v60 }
  0x33   :  { %420 = vmatpush.msra.mxu0 %v2859_v59  ;;  %465 = vmatpush.msra.mxu1 %v2842_v51 }
  0x34   :  { %358 = vmatpush.msrb.mxu3 %v357_v57  ;;  %277 = vmatpush.msrb.mxu2 %v2874_v2 }
  0x35   :  { %423 = vmatpush.msra.mxu0 %v2869_v0  ;;  %467 = vmatpush.msra.mxu1 %v2844_v52 }
  0x36   :  { %364 = vmatpush.msrb.mxu3 %v363_v3  ;;  %279 = vmatpush.msrb.mxu2 %v2893_v24  ;;  %v617_v3 = vld [vmem:[#allocation8 + $0xd8] sm:$0xff] }
  0x37   :  { %426 = vmatpush.msra.mxu0 %v2882_v10  ;;  %469 = vmatpush.msra.mxu1 %v2852_v56  ;;  %v3097_v4 = vand.u32 4294901760, %v617_v3 }
  0x38   :  { %370 = vmatpush.msrb.mxu3 %v369_v12  ;;  %281 = vmatpush.msrb.mxu2 %v2906_v35 }
  0x39   :  { %429 = vmatpush.msra.mxu0 %v2887_v11  ;;  %471 = vmatpush.msra.mxu1 %v2861_v60  ;;  %v3100_v12 = vsub.f32 %v617_v3, %v3097_v4 }
  0x3a   :  { %376 = vmatpush.msrb.mxu3 %v375_v17  ;;  %283 = vmatpush.msrb.mxu2 %v2918_v41  ;;  %v615_v17 = vld [vmem:[#allocation8 + $0xc8] sm:$0xff] }
  0x3b   :  { %432 = vmatpush.msra.mxu0 %v2899_v28  ;;  %473 = vmatpush.msra.mxu1 %v2874_v2  ;;  %v704_v31 = vand.u32 4294901760, %v3100_v12 }
  0x3c   :  { %490 = vmatpush.msra.mxu2 %v295_v25  ;;  %382 = vmatpush.msrb.mxu3 %v381_v32  ;;  %v3029_v25 = vand.u32 4294901760, %v621_v19 }
  0x3d   :  { %435 = vmatpush.msra.mxu0 %v2916_v40  ;;  %475 = vmatpush.msra.mxu1 %v2893_v24 }
  0x3e   :  { %494 = vmatpush.msra.mxu2 %v301_v26  ;;  %388 = vmatpush.msrb.mxu3 %v387_v33  ;;  %v620_v26 = vld [vmem:[#allocation8 + $0xf0] sm:$0xff]  ;;  %v3110_v33 = vand.u32 4294901760, %v615_v17 }
  0x3f   :  { %438 = vmatpush.msra.mxu0 %v2928_v45  ;;  %477 = vmatpush.msra.mxu1 %v2906_v35  ;;  %v3031_v36 = vand.u32 4294901760, %v620_v26 }
  0x40   :  { %557 = vmatpush.msra.mxu3 %v2785_v8  ;;  %498 = vmatpush.msra.mxu2 %v307_v29  ;;  %v2592_v8 = vld [vmem:[#allocation9] ss:$0 sm:$0xff]  ;;  %v618_v29 = vld [vmem:[#allocation8 + $0xe0] sm:$0xff] }
  0x41   :  { %441 = vmatpush.msra.mxu0 %v2938_v54  ;;  %479 = vmatpush.msra.mxu1 %v2918_v41 }
  0x42   :  { %559 = vmatpush.msra.mxu3 %v2787_v9  ;;  %502 = vmatpush.msra.mxu2 %v313_v30 }
  0x44   :  { %561 = vmatpush.msra.mxu3 %v2789_v13  ;;  %506 = vmatpush.msra.mxu2 %v319_v39 }
  0x46   :  { %563 = vmatpush.msra.mxu3 %v2791_v14  ;;  %510 = vmatpush.msra.mxu2 %v325_v47  ;;  %v3035_v47 = vand.u32 4294901760, %v618_v29 }
  0x48   :  { %565 = vmatpush.msra.mxu3 %v2793_v15  ;;  %514 = vmatpush.msra.mxu2 %v331_v63  ;;  %v623_v15 = vld [vmem:[#allocation8 + $0x108] sm:$0xff]  ;;  %v3058_v0 = vsub.f32 %v618_v29, %v3035_v47 }
  0x49   :  { %v3025_v22 = vand.u32 4294901760, %v623_v15 }
  0x4a   :  { %567 = vmatpush.msra.mxu3 %v2813_v27  ;;  %518 = vmatpush.msra.mxu2 %v337_v1  ;;  %v619_v27 = vld [vmem:[#allocation8 + $0xe8] sm:$0xff]  ;;  %v698_v38 = vand.u32 4294901760, %v3058_v0 }
  0x4b   :  { %v3033_v39 = vand.u32 4294901760, %v619_v27  ;;  %626 = vmatpush.msrb.mxu0 %v3025_v22 }
  0x4c   :  { %569 = vmatpush.msra.mxu3 %v2837_v48  ;;  %522 = vmatpush.msra.mxu2 %v343_v6  ;;  %v699_v45 = vsub.f32 %v3058_v0, %v698_v38 }
  0x4d   :  { %v3051_v58 = vsub.f32 %v619_v27, %v3033_v39  ;;  %628 = vmatpush.msrb.mxu0 %v3027_v23 }
  0x4e   :  { %571 = vmatpush.msra.mxu3 %v2840_v50  ;;  %526 = vmatpush.msra.mxu2 %v349_v20  ;;  %v3038_v50 = vsub.f32 %v623_v15, %v3025_v22  ;;  %v700_v54 = vand.u32 4294901760, %v699_v45  ;;  %v609_v45 = vld [vmem:[#allocation8 + $0x98] sm:$0xff] }
  0x4f   :  { %v692_v28 = vand.u32 4294901760, %v3051_v58  ;;  %630 = vmatpush.msrb.mxu0 %v3029_v25 }
  0x50   :  { %573 = vmatpush.msra.mxu3 %v2842_v51  ;;  %530 = vmatpush.msra.mxu2 %v355_v34  ;;  %v3041_v51 = vsub.f32 %v622_v18, %v3027_v23  ;;  %v668_v59 = vand.u32 4294901760, %v3038_v50  ;;  %v613_v18 = vld [vmem:[#allocation8 + $0xb8] sm:$0xff] }
  0x51   :  { %632 = vmatpush.msrb.mxu0 %v3031_v36  ;;  %v693_v42 = vsub.f32 %v3051_v58, %v692_v28  ;;  %v3136_v29 = vand.u32 4294901760, %v613_v18 }
  0x52   :  { %575 = vmatpush.msra.mxu3 %v2844_v52  ;;  %534 = vmatpush.msra.mxu2 %v361_v37  ;;  %v3044_v52 = vsub.f32 %v621_v19, %v3029_v25  ;;  %v669_v11 = vsub.f32 %v3038_v50, %v668_v59 }
  0x53   :  { %634 = vmatpush.msrb.mxu0 %v3033_v39  ;;  %v694_v49 = vand.u32 4294901760, %v693_v42 }
  0x54   :  { %577 = vmatpush.msra.mxu3 %v2852_v56  ;;  %538 = vmatpush.msra.mxu2 %v367_v44  ;;  %v3048_v56 = vsub.f32 %v620_v26, %v3031_v36  ;;  %v680_v63 = vand.u32 4294901760, %v3044_v52 }
  0x55   :  { %636 = vmatpush.msrb.mxu0 %v3035_v47 }
  0x56   :  { %579 = vmatpush.msra.mxu3 %v2861_v60  ;;  %542 = vmatpush.msra.mxu2 %v373_v53  ;;  %v674_v60 = vand.u32 4294901760, %v3041_v51 }
  0x57   :  { %638 = vmatpush.msrb.mxu0 %v3097_v4 }
  0x58   :  { %581 = vmatpush.msra.mxu3 %v2874_v2  ;;  %546 = vmatpush.msra.mxu2 %v379_v62  ;;  %v686_v2 = vand.u32 4294901760, %v3048_v56  ;;  %v675_v20 = vsub.f32 %v3041_v51, %v674_v60 }
  0x5a   :  { %583 = vmatpush.msra.mxu3 %v2893_v24  ;;  %550 = vmatpush.msra.mxu2 %v385_v5  ;;  %v681_v24 = vsub.f32 %v3044_v52, %v680_v63  ;;  %v676_v37 = vand.u32 4294901760, %v675_v20  ;;  %v687_v7 = vsub.f32 %v3048_v56, %v686_v2  ;;  %v616_v5 = vld [vmem:[#allocation8 + $0xd0] sm:$0xff] }
  0x5b   :  { %v3102_v16 = vand.u32 4294901760, %v616_v5 }
  0x5c   :  { %585 = vmatpush.msra.mxu3 %v2906_v35  ;;  %v670_v35 = vand.u32 4294901760, %v669_v11  ;;  %v688_v44 = vand.u32 4294901760, %v687_v7  ;;  %v611_v11 = vld [vmem:[#allocation8 + $0xa8] sm:$0xff]  ;;  %v610_v7 = vld [vmem:[#allocation8 + $0xa0] sm:$0xff] }
  0x5d   :  { %v3108_v32 = vsub.f32 %v616_v5, %v3102_v16  ;;  %640 = vmatpush.msrb.mxu0 %v3102_v16 }
  0x5e   :  { %587 = vmatpush.msra.mxu3 %v2918_v41  ;;  %671 = vmatpush.msrb.mxu1 %v670_v35  ;;  %v682_v41 = vand.u32 4294901760, %v681_v24  ;;  %v3157_v35 = vand.u32 4294901760, %v611_v11 }
  0x5f   :  { %642 = vmatpush.msrb.mxu0 %v3110_v33 }
  0x60   :  { %677 = vmatpush.msrb.mxu1 %v676_v37  ;;  %v3164_v42 = vsub.f32 %v611_v11, %v3157_v35 }
  0x62   :  { %683 = vmatpush.msrb.mxu1 %v682_v41 }
  0x64   :  { %689 = vmatpush.msrb.mxu1 %v688_v44 }
  0x66   :  { %695 = vmatpush.msrb.mxu1 %v694_v49  ;;  %v740_v49 = vand.u32 4294901760, %v3164_v42 }
  0x68   :  { %701 = vmatpush.msrb.mxu1 %v700_v54  ;;  %v3179_v54 = vand.u32 4294901760, %v609_v45  ;;  %v741_v3 = vsub.f32 %v3164_v42, %v740_v49 }
  0x9c   :  { %v110_v9 = vpop.f32.mrf.mxu0  ;;  %v136_v13 = vpop.f32.mrf.mxu1 }
  0x9d   :  { %v111_v14 = vadd.f32 %v2592_v8, %v110_v9  ;;  %v160_v21 = vpop.f32.mrf.mxu2  ;;  %v614_v8 = vld [vmem:[#allocation8 + $0xc0] sm:$0xff]  ;;  %v705_v9 = vsub.f32 %v3100_v12, %v704_v31 }
  0x9e   :  { %v184_v48 = vpop.f32.mrf.mxu3  ;;  %v3122_v15 = vand.u32 4294901760, %v614_v8 }
  0x9f   :  { %v137_v30 = vadd.f32 %v136_v13, %v111_v14  ;;  %v710_v13 = vand.u32 4294901760, %v3108_v32  ;;  %v3120_v14 = vsub.f32 %v615_v17, %v3110_v33  ;;  %v706_v19 = vand.u32 4294901760, %v705_v9 }
  0xa0   :  { %v3132_v27 = vsub.f32 %v614_v8, %v3122_v15  ;;  %644 = vmatpush.msrb.mxu0 %v3122_v15  ;;  %v751_v17 = vsub.f32 %v609_v45, %v3179_v54  ;;  %v742_v9 = vand.u32 4294901760, %v741_v3 }
  0xa1   :  { %v161_v55 = vadd.f32 %v160_v21, %v137_v30  ;;  %v711_v21 = vsub.f32 %v3108_v32, %v710_v13  ;;  %v716_v26 = vand.u32 4294901760, %v3120_v14  ;;  %v612_v30 = vld [vmem:[#allocation8 + $0xb0] sm:$0xff]  ;;  %707 = vmatpush.msrb.mxu1 %v706_v19 }
  0xa2   :  { %646 = vmatpush.msrb.mxu0 %v3136_v29  ;;  %v752_v19 = vand.u32 4294901760, %v751_v17 }
  0xa3   :  { %v185_v1 = vadd.f32 %v184_v48, %v161_v55  ;;  %v712_v48 = vand.u32 4294901760, %v711_v21  ;;  %v717_v55 = vsub.f32 %v3120_v14, %v716_v26 }
  0xa4   :  { %v208_v6 = vpop.f32.mrf.mxu0  ;;  %v230_v10 = vpop.f32.mrf.mxu1 }
  0xa5   :  { %v209_v34 = vadd.f32 %v208_v6, %v185_v1  ;;  %v722_v1 = vand.u32 4294901760, %v3132_v27  ;;  %v3143_v6 = vand.u32 4294901760, %v612_v30  ;;  %713 = vmatpush.msrb.mxu1 %v712_v48  ;;  %v718_v20 = vand.u32 4294901760, %v717_v55 }
  0xa6   :  { %v753_v48 = vsub.f32 %v751_v17, %v752_v19 }
  0xa7   :  { %v231_v40 = vadd.f32 %v230_v10, %v209_v34  ;;  %v3147_v10 = vsub.f32 %v613_v18, %v3136_v29  ;;  %v723_v24 = vsub.f32 %v3132_v27, %v722_v1  ;;  %v3155_v34 = vsub.f32 %v612_v30, %v3143_v6  ;;  %648 = vmatpush.msrb.mxu0 %v3143_v6 }
  0xa8   :  { %719 = vmatpush.msrb.mxu1 %v718_v20  ;;  %v754_v11 = vand.u32 4294901760, %v753_v48 }
  0xa9   :  { %v233_v43 = vmax.f32 %v231_v40, 0.0  ;;  %v728_v37 = vand.u32 4294901760, %v3147_v10  ;;  %v724_v40 = vand.u32 4294901760, %v723_v24  ;;  %v734_v41 = vand.u32 4294901760, %v3155_v34  ;;  %650 = vmatpush.msrb.mxu0 %v3157_v35 }
  0xab   :  { %v284_v46 = vand.u32 4294901760, %v233_v43  ;;  %v729_v44 = vsub.f32 %v3147_v10, %v728_v37  ;;  %725 = vmatpush.msrb.mxu1 %v724_v40 }
  0xad   :  { %v285_v53 = vsub.f32 %v233_v43, %v284_v46  ;;  %390 = vmatmul.f32.vlgmr.msrb.gmra.mxu3 %v284_v46  ;;  %v3166_v43 = vand.u32 4294901760, %v610_v7 }
  0xae   :  { %822 = vmatpush.msrb.mxu3 %v3025_v22 }
  0xaf   :  { %444 = vmatmul.f32.vlgmr.msra.gmra.mxu0 %v285_v53  ;;  %v286_v57 = vand.u32 4294901760, %v285_v53 }
  0xb0   :  { %824 = vmatpush.msrb.mxu3 %v3027_v23  ;;  %652 = vmatpush.msrb.mxu0 %v3166_v43 }
  0xb1   :  { %483 = vmatmul.f32.vlgmr.msra.gmra.mxu1 %v286_v57  ;;  %v287_v61 = vsub.f32 %v285_v53, %v286_v57  ;;  %v745_v53 = vsub.f32 %v610_v7, %v3166_v43  ;;  %v730_v57 = vand.u32 4294901760, %v729_v44  ;;  %v1136_v7 = vld [vmem:[#allocation8 + $0x178] sm:$0xff]  ;;  %v1135_v44 = vld [vmem:[#allocation8 + $0x170] sm:$0xff] }
  0xb2   :  { %826 = vmatpush.msrb.mxu3 %v3029_v25  ;;  %654 = vmatpush.msrb.mxu0 %v3179_v54 }
  0xb3   :  { %v288_v62 = vand.u32 4294901760, %v287_v61  ;;  %v608_v61 = vld [vmem:[#allocation8 + $0x90] sm:$0xff]  ;;  %v746_v5 = vand.u32 4294901760, %v745_v53  ;;  %731 = vmatpush.msrb.mxu1 %v730_v57  ;;  %v3260_v57 = vand.u32 4294901760, %v1135_v44 }
  0xb4   :  { %828 = vmatpush.msrb.mxu3 %v3031_v36  ;;  %v3187_v8 = vand.u32 4294901760, %v608_v61 }
  0xb5   :  { %289 = vmatmul.f32.vlgmr.msrb.gmra.mxu2 %v288_v62  ;;  %589 = vmatmul.f32.vlgmr.msra.gmra.mxu3 %v284_v46  ;;  %v747_v18 = vsub.f32 %v745_v53, %v746_v5 }
  0xb6   :  { %769 = vmatpush.msrb.mxu2 %v3038_v50  ;;  %830 = vmatpush.msrb.mxu3 %v3033_v39  ;;  %v757_v21 = vsub.f32 %v608_v61, %v3187_v8  ;;  %v968_v50 = vld [vmem:[#allocation8 + $0x88] sm:$0xff] }
  0xb7   :  { %656 = vmatpush.msrb.mxu0 %v3187_v8  ;;  %v748_v30 = vand.u32 4294901760, %v747_v18 }
  0xb8   :  { %772 = vmatpush.msrb.mxu2 %v3041_v51  ;;  %832 = vmatpush.msrb.mxu3 %v3035_v47  ;;  %v758_v55 = vand.u32 4294901760, %v757_v21 }
  0xb9   :  { %863 = vmatpush.msra.mxu0 %v668_v59 }
  0xba   :  { %775 = vmatpush.msrb.mxu2 %v3044_v52  ;;  %834 = vmatpush.msrb.mxu3 %v3097_v4  ;;  %v759_v20 = vsub.f32 %v757_v21, %v758_v55  ;;  %v3232_v52 = vand.u32 4294901760, %v968_v50 }
  0xbb   :  { %867 = vmatpush.msra.mxu0 %v674_v60 }
  0xbc   :  { %778 = vmatpush.msrb.mxu2 %v3048_v56  ;;  %836 = vmatpush.msrb.mxu3 %v3102_v16  ;;  %v760_v24 = vand.u32 4294901760, %v759_v20  ;;  %v3237_v60 = vsub.f32 %v968_v50, %v3232_v52 }
  0xbd   :  { %552 = vmatmul.f32.vlgmr.msra.gmra.mxu2 %v284_v46  ;;  %v735_v46 = vsub.f32 %v3155_v34, %v734_v41  ;;  %871 = vmatpush.msra.mxu0 %v680_v63 }
  0xbe   :  { %781 = vmatpush.msrb.mxu2 %v3051_v58  ;;  %838 = vmatpush.msrb.mxu3 %v3110_v33 }
  0xbf   :  { %v736_v62 = vand.u32 4294901760, %v735_v46  ;;  %875 = vmatpush.msra.mxu0 %v686_v2 }
  0xc0   :  { %784 = vmatpush.msrb.mxu2 %v3058_v0  ;;  %840 = vmatpush.msrb.mxu3 %v3122_v15 }
  0xc1   :  { %737 = vmatpush.msrb.mxu1 %v736_v62  ;;  %879 = vmatpush.msra.mxu0 %v692_v28  ;;  %v1018_v28 = vand.u32 4294901760, %v3237_v60  ;;  %v1133_v62 = vld [vmem:[#allocation8 + $0x160] sm:$0xff] }
  0xc2   :  { %787 = vmatpush.msrb.mxu2 %v3100_v12  ;;  %842 = vmatpush.msrb.mxu3 %v3136_v29 }
  0xc3   :  { %743 = vmatpush.msrb.mxu1 %v742_v9  ;;  %883 = vmatpush.msra.mxu0 %v698_v38  ;;  %v1019_v12 = vsub.f32 %v3237_v60, %v1018_v28 }
  0xc4   :  { %790 = vmatpush.msrb.mxu2 %v3108_v32  ;;  %844 = vmatpush.msrb.mxu3 %v3143_v6 }
  0xc5   :  { %749 = vmatpush.msrb.mxu1 %v748_v30  ;;  %887 = vmatpush.msra.mxu0 %v704_v31  ;;  %v1020_v32 = vand.u32 4294901760, %v1019_v12 }
  0xc6   :  { %793 = vmatpush.msrb.mxu2 %v3120_v14  ;;  %846 = vmatpush.msrb.mxu3 %v3157_v35 }
  0xc7   :  { %755 = vmatpush.msrb.mxu1 %v754_v11  ;;  %891 = vmatpush.msra.mxu0 %v710_v13  ;;  %v967_v13 = vld [vmem:[#allocation6] sm:$0xff] }
  0xc8   :  { %796 = vmatpush.msrb.mxu2 %v3132_v27  ;;  %848 = vmatpush.msrb.mxu3 %v3166_v43  ;;  %v973_v27 = vsel %vm83_vm0, %v967_v13, 0 }
  0xc9   :  { %761 = vmatpush.msrb.mxu1 %v760_v24  ;;  %895 = vmatpush.msra.mxu0 %v716_v26 }
  0xca   :  { %799 = vmatpush.msrb.mxu2 %v3147_v10  ;;  %850 = vmatpush.msrb.mxu3 %v3179_v54 }
  0xcb   :  { %930 = vmatpush.msra.mxu1 %v3025_v22  ;;  %899 = vmatpush.msra.mxu0 %v722_v1  ;;  %v2593_v22 = vld [vmem:[#allocation9 + $0x1] ss:$0 sm:$0xff] }
  0xcc   :  { %802 = vmatpush.msrb.mxu2 %v3155_v34  ;;  %852 = vmatpush.msrb.mxu3 %v3187_v8 }
  0xcd   :  { %932 = vmatpush.msra.mxu1 %v3027_v23  ;;  %903 = vmatpush.msra.mxu0 %v728_v37  ;;  %v2743_v23 = vmov 8.0   ;;  %v1137_v37 = vld [vmem:[#allocation8 + $0x180] sm:$0xff] }
  0xce   :  { %805 = vmatpush.msrb.mxu2 %v3164_v42  ;;  %2599 = vrcp.f32 %v2743_v23  ;;  %1021 = vmatpush.msra.mxu3 %v1020_v32  ;;  %v3247_v42 = vand.u32 4294901760, %v1137_v37 }
  0xcf   :  { %934 = vmatpush.msra.mxu1 %v3029_v25  ;;  %907 = vmatpush.msra.mxu0 %v734_v41 }
  0xd0   :  { %808 = vmatpush.msrb.mxu2 %v745_v53 }
  0xd1   :  { %936 = vmatpush.msra.mxu1 %v3031_v36  ;;  %911 = vmatpush.msra.mxu0 %v740_v49  ;;  %v1134_v49 = vld [vmem:[#allocation8 + $0x168] sm:$0xff] }
  0xd2   :  { %811 = vmatpush.msrb.mxu2 %v751_v17  ;;  %v3266_v17 = vand.u32 4294901760, %v1134_v49 }
  0xd3   :  { %938 = vmatpush.msra.mxu1 %v3033_v39  ;;  %915 = vmatpush.msra.mxu0 %v746_v5 }
  0xd4   :  { %814 = vmatpush.msrb.mxu2 %v757_v21  ;;  %v2600_v56 = vpop.eup %2599  ;;  %v3273_v21 = vand.u32 4294901760, %v1133_v62  ;;  %v3281_v11 = vsub.f32 %v1134_v49, %v3266_v17  ;;  %v1127_v49 = vld [vmem:[#allocation8 + $0x130] sm:$0xff] }
  0xd5   :  { %940 = vmatpush.msra.mxu1 %v3035_v47  ;;  %919 = vmatpush.msra.mxu0 %v752_v19  ;;  %v601_v2 = vmul.f32 8.0, %v2600_v56  ;;  %vm605_vm1 = vweird.f32 %v2600_v56  ;;  %v3271_v19 = vsub.f32 %v1135_v44, %v3260_v57 }
  0xd6   :  { %991 = vmatpush.msra.mxu2 %v3232_v52  ;;  %v1206_v50 = vand.u32 4294901760, %v3281_v11 }
  0xd7   :  { %942 = vmatpush.msra.mxu1 %v3097_v4  ;;  %923 = vmatpush.msra.mxu0 %v758_v55  ;;  %v602_v31 = vsub.f32 1.0, %v601_v2  ;;  %v1200_v23 = vand.u32 4294901760, %v3271_v19 }
  0xd9   :  { %944 = vmatpush.msra.mxu1 %v3102_v16 }
  0xdb   :  { %946 = vmatpush.msra.mxu1 %v3110_v33 }
  0xdd   :  { %948 = vmatpush.msra.mxu1 %v3122_v15  ;;  %v603_v15 = vmul.f32 %v2600_v56, %v602_v31 }
  0xdf   :  { %950 = vmatpush.msra.mxu1 %v3136_v29  ;;  %v604_v1 = vadd.f32 %v2600_v56, %v603_v15 }
  0xe1   :  { %952 = vmatpush.msra.mxu1 %v3143_v6  ;;  %v3243_v6 = vand.u32 4294901760, %v973_v27  ;;  %v606_v40 = vsel %vm605_vm1, %v2600_v56, %v604_v1 }
  0xe3   :  { %954 = vmatpush.msra.mxu1 %v3157_v35  ;;  %v1138_v35 = vld [vmem:[#allocation8 + $0x188] sm:$0xff]  ;;  %v3252_v45 = vsub.f32 %v973_v27, %v3243_v6 }
  0xe4   :  { %v3245_v41 = vand.u32 4294901760, %v1138_v35 }
  0xe5   :  { %956 = vmatpush.msra.mxu1 %v3166_v43  ;;  %v3249_v43 = vand.u32 4294901760, %v1136_v7  ;;  %v994_v9 = vand.u32 4294901760, %v3252_v45 }
  0xe6   :  { %v3255_v53 = vsub.f32 %v1138_v35, %v3245_v41 }
  0xe7   :  { %958 = vmatpush.msra.mxu1 %v3179_v54  ;;  %v3258_v54 = vsub.f32 %v1137_v37, %v3247_v42  ;;  %v3264_v5 = vsub.f32 %v1136_v7, %v3249_v43  ;;  %v995_v24 = vsub.f32 %v3252_v45, %v994_v9  ;;  %v1128_v7 = vld [vmem:[#allocation8 + $0x138] sm:$0xff] }
  0xe8   :  { %v1182_v3 = vand.u32 4294901760, %v3255_v53 }
  0xe9   :  { %960 = vmatpush.msra.mxu1 %v3187_v8  ;;  %v1188_v18 = vand.u32 4294901760, %v3258_v54  ;;  %v1194_v55 = vand.u32 4294901760, %v3264_v5  ;;  %v996_v56 = vand.u32 4294901760, %v995_v24 }
  0xea   :  { %v1183_v48 = vsub.f32 %v3255_v53, %v1182_v3 }
 0x12c   :  { %v445_v51 = vpop.f32.mrf.mxu0 }
 0x12e   :  { %v484_v59 = vpop.f32.mrf.mxu1 }
 0x130   :  { %v391_v25 = vpop.f32.mrf.mxu3 }
 0x138   :  { %v290_v36 = vpop.f32.mrf.mxu2  ;;  %v590_v4 = vpop.f32.mrf.mxu3 }
 0x139   :  { %v291_v39 = vadd.f32 %v2593_v22, %v290_v36  ;;  %v1189_v22 = vsub.f32 %v3258_v54, %v1188_v18 }
 0x13b   :  { %v392_v47 = vadd.f32 %v391_v25, %v291_v39  ;;  %v3289_v25 = vsub.f32 %v1133_v62, %v3273_v21  ;;  %v1184_v39 = vand.u32 4294901760, %v1183_v48  ;;  %v3379_v62 = vand.u32 4294901760, %v1127_v49 }
 0x13d   :  { %v446_v58 = vadd.f32 %v445_v51, %v392_v47  ;;  %v1195_v47 = vsub.f32 %v3264_v5, %v1194_v55 }
 0x13f   :  { %v485_v63 = vadd.f32 %v484_v59, %v446_v58  ;;  %v1190_v58 = vand.u32 4294901760, %v1189_v22  ;;  %v1201_v59 = vsub.f32 %v3271_v19, %v1200_v23 }
 0x140   :  { %v553_v0 = vpop.f32.mrf.mxu2 }
 0x141   :  { %v554_v38 = vadd.f32 %v553_v0, %v485_v63  ;;  %v1212_v63 = vand.u32 4294901760, %v3289_v25  ;;  %v1207_v0 = vsub.f32 %v3281_v11, %v1206_v50  ;;  %v1202_v2 = vand.u32 4294901760, %v1201_v59 }
 0x143   :  { %v591_v16 = vadd.f32 %v590_v4, %v554_v38  ;;  %v1208_v38 = vand.u32 4294901760, %v1207_v0  ;;  %v1132_v4 = vld [vmem:[#allocation8 + $0x158] sm:$0xff] }
 0x144   :  { %v3329_v12 = vand.u32 4294901760, %v1132_v4 }
 0x145   :  { %v593_v33 = vmax.f32 %v591_v16, 0.0  ;;  %v1131_v16 = vld [vmem:[#allocation8 + $0x150] sm:$0xff] }
 0x146   :  { %v3332_v31 = vsub.f32 %v1132_v4, %v3329_v12  ;;  %v3334_v32 = vand.u32 4294901760, %v1131_v16 }
 0x147   :  { %v594_v14 = vrot.slane %v593_v33, 4 }
 0x148   :  { %v1218_v13 = vand.u32 4294901760, %v3332_v31 }
 0x149   :  { %v595_v26 = vadd.f32 %v594_v14, %v593_v33  ;;  %v1130_v33 = vld [vmem:[#allocation8 + $0x148] sm:$0xff]  ;;  %v3340_v14 = vsub.f32 %v1131_v16, %v3334_v32 }
 0x14a   :  { %v3342_v15 = vand.u32 4294901760, %v1130_v33  ;;  %v1219_v27 = vsub.f32 %v3332_v31, %v1218_v13 }
 0x14b   :  { %v596_v29 = vrot.slane %v595_v26, 2 }
 0x14c   :  { %v3352_v1 = vsub.f32 %v1130_v33, %v3342_v15 }
 0x14d   :  { %v597_v10 = vadd.f32 %v596_v29, %v595_v26  ;;  %v1129_v26 = vld [vmem:[#allocation8 + $0x140] sm:$0xff]  ;;  %v1224_v29 = vand.u32 4294901760, %v3340_v14 }
 0x14e   :  { %v1230_v35 = vand.u32 4294901760, %v3352_v1 }
 0x14f   :  { %v598_v34 = vrot.slane %v597_v10, 1 }
 0x151   :  { %v599_v46 = vadd.f32 %v598_v34, %v597_v10  ;;  %v1220_v10 = vand.u32 4294901760, %v1219_v27  ;;  %v1225_v34 = vsub.f32 %v3340_v14, %v1224_v29 }
 0x153   :  { %v607_v61 = vmul.f32 %v606_v40, %v599_v46  ;;  %v3368_v40 = vand.u32 4294901760, %v1128_v7  ;;  %v1226_v44 = vand.u32 4294901760, %v1225_v34 }
 0x155   :  { %v657_v8 = vand.u32 4294901760, %v607_v61 }
 0x157   :  { %763 = vmatmul.f32.vlgmr.msrb.gmra.mxu1 %v657_v8  ;;  %v658_v30 = vsub.f32 %v607_v61, %v657_v8  ;;  %v3377_v61 = vsub.f32 %v1128_v7, %v3368_v40 }
 0x158   :  { %1067 = vmatpush.msrb.mxu1 %v3232_v52 }
 0x159   :  { %817 = vmatmul.f32.vlgmr.msrb.gmra.mxu2 %v658_v30  ;;  %v659_v20 = vand.u32 4294901760, %v658_v30  ;;  %v1242_v48 = vand.u32 4294901760, %v3377_v61 }
 0x15a   :  { %1093 = vmatpush.msrb.mxu2 %v1018_v28  ;;  %v1213_v28 = vsub.f32 %v3289_v25, %v1212_v63 }
 0x15b   :  { %856 = vmatmul.f32.vlgmr.msrb.gmra.mxu3 %v659_v20  ;;  %v660_v36 = vsub.f32 %v658_v30, %v659_v20  ;;  %v1126_v30 = vld [vmem:[#allocation8 + $0x128] sm:$0xff]  ;;  %v3388_v20 = vsub.f32 %v1127_v49, %v3379_v62 }
 0x15c   :  { %1115 = vmatpush.msrb.mxu3 %v3232_v52  ;;  %v1196_v52 = vand.u32 4294901760, %v1195_v47  ;;  %v3390_v24 = vand.u32 4294901760, %v1126_v30 }
 0x15d   :  { %v661_v51 = vand.u32 4294901760, %v660_v36  ;;  %v1125_v36 = vld [vmem:[#allocation8 + $0x120] sm:$0xff]  ;;  %v1248_v47 = vand.u32 4294901760, %v3388_v20 }
 0x15f   :  { %662 = vmatmul.f32.vlgmr.msrb.gmra.mxu0 %v661_v51  ;;  %962 = vmatmul.f32.vlgmr.msra.gmra.mxu1 %v657_v8  ;;  %v3400_v51 = vsub.f32 %v1126_v30, %v3390_v24 }
 0x160   :  { %1044 = vmatpush.msrb.mxu0 %v3237_v60  ;;  %1185 = vmatpush.msra.mxu1 %v1184_v39  ;;  %v1214_v60 = vand.u32 4294901760, %v1213_v28  ;;  %v1243_v39 = vsub.f32 %v3377_v61, %v1242_v48 }
 0x161   :  { %997 = vmatmul.f32.vlgmr.msra.gmra.mxu2 %v996_v56  ;;  %v3402_v56 = vand.u32 4294901760, %v1125_v36  ;;  %v1254_v0 = vand.u32 4294901760, %v3400_v51 }
 0x162   :  { %1191 = vmatpush.msra.mxu1 %v1190_v58  ;;  %1283 = vmatpush.msra.mxu2 %v3255_v53  ;;  %v1124_v58 = vld [vmem:[#allocation8 + $0x118] sm:$0xff]  ;;  %v1244_v59 = vand.u32 4294901760, %v1243_v39 }
 0x163   :  { %1023 = vmatmul.f32.vlgmr.msra.gmra.mxu3 %v3243_v6  ;;  %v3414_v28 = vand.u32 4294901760, %v1124_v58  ;;  %v1255_v4 = vsub.f32 %v3400_v51, %v1254_v0 }
 0x164   :  { %1197 = vmatpush.msra.mxu1 %v1196_v52  ;;  %1286 = vmatpush.msra.mxu2 %v3258_v54  ;;  %v1249_v52 = vsub.f32 %v3388_v20, %v1248_v47 }
 0x165   :  { %1336 = vmatpush.msra.mxu3 %v3245_v41  ;;  %v1256_v27 = vand.u32 4294901760, %v1255_v4 }
 0x166   :  { %1203 = vmatpush.msra.mxu1 %v1202_v2  ;;  %1289 = vmatpush.msra.mxu2 %v3264_v5  ;;  %v1259_v2 = vsub.f32 %v1125_v36, %v3402_v56 }
 0x167   :  { %925 = vmatmul.f32.vlgmr.msra.gmra.mxu0 %v657_v8  ;;  %1071 = vmatmul.f32.vlgmr.msrb.gmra.mxu1 %v994_v9 }
 0x168   :  { %1140 = vmatpush.msra.mxu0 %v3245_v41  ;;  %1209 = vmatpush.msra.mxu1 %v1208_v38  ;;  %v1123_v38 = vld [vmem:[#allocation8 + $0x110] sm:$0xff]  ;;  %v1260_v16 = vand.u32 4294901760, %v1259_v2 }
 0x169   :  { %1095 = vmatmul.f32.vlgmr.msrb.gmra.mxu2 %v3243_v6  ;;  %1338 = vmatpush.msra.mxu3 %v3247_v42  ;;  %v3418_v33 = vand.u32 4294901760, %v1123_v38 }
 0x16a   :  { %1142 = vmatpush.msra.mxu0 %v3247_v42  ;;  %1215 = vmatpush.msra.mxu1 %v1214_v60  ;;  %v1250_v60 = vand.u32 4294901760, %v1249_v52 }
 0x16b   :  { %1117 = vmatmul.f32.vlgmr.msrb.gmra.mxu3 %v3243_v6  ;;  %1292 = vmatpush.msra.mxu2 %v3271_v19  ;;  %v3354_v6 = vand.u32 4294901760, %v1129_v26  ;;  %v1271_v34 = vsub.f32 %v1123_v38, %v3418_v33 }
 0x16c   :  { %1144 = vmatpush.msra.mxu0 %v3249_v43  ;;  %1340 = vmatpush.msra.mxu3 %v3249_v43 }
 0x16d   :  { %1295 = vmatpush.msra.mxu2 %v3281_v11  ;;  %v3364_v37 = vsub.f32 %v1129_v26, %v3354_v6  ;;  %1221 = vmatpush.msra.mxu1 %v1220_v10  ;;  %v1265_v26 = vsub.f32 %v1124_v58, %v3414_v28  ;;  %v1261_v10 = vsub.f32 %v1259_v2, %v1260_v16 }
 0x16e   :  { %1146 = vmatpush.msra.mxu0 %v3260_v57  ;;  %1342 = vmatpush.msra.mxu3 %v3260_v57 }
 0x16f   :  { %1047 = vmatmul.f32.vlgmr.msrb.gmra.mxu0 %v3252_v45  ;;  %1298 = vmatpush.msra.mxu2 %v3289_v25  ;;  %v1231_v45 = vsub.f32 %v3352_v1, %v1230_v35  ;;  %v1236_v46 = vand.u32 4294901760, %v3364_v37  ;;  %v1266_v7 = vand.u32 4294901760, %v1265_v26 }
 0x170   :  { %1148 = vmatpush.msra.mxu0 %v3266_v17  ;;  %1344 = vmatpush.msra.mxu3 %v3266_v17 }
 0x171   :  { %1301 = vmatpush.msra.mxu2 %v3332_v31  ;;  %1227 = vmatpush.msra.mxu1 %v1226_v44  ;;  %v1232_v8 = vand.u32 4294901760, %v1231_v45  ;;  %v1237_v9 = vsub.f32 %v3364_v37, %v1236_v46  ;;  %v1262_v44 = vand.u32 4294901760, %v1261_v10  ;;  %v1272_v45 = vand.u32 4294901760, %v1271_v34 }
 0x172   :  { %1150 = vmatpush.msra.mxu0 %v3273_v21  ;;  %1346 = vmatpush.msra.mxu3 %v3273_v21  ;;  %v1267_v49 = vsub.f32 %v1265_v26, %v1266_v7 }
 0x173   :  { %1304 = vmatpush.msra.mxu2 %v3340_v14  ;;  %1233 = vmatpush.msra.mxu1 %v1232_v8  ;;  %v1238_v22 = vand.u32 4294901760, %v1237_v9  ;;  %v1273_v8 = vsub.f32 %v1271_v34, %v1272_v45  ;;  %v1498_v14 = vld [vmem:[#allocation8 + $0x208] sm:$0xff] }
 0x174   :  { %1152 = vmatpush.msra.mxu0 %v3329_v12  ;;  %1348 = vmatpush.msra.mxu3 %v3329_v12  ;;  %v1268_v9 = vand.u32 4294901760, %v1267_v49 }
 0x175   :  { %1307 = vmatpush.msra.mxu2 %v3352_v1  ;;  %1239 = vmatpush.msra.mxu1 %v1238_v22  ;;  %v1274_v30 = vand.u32 4294901760, %v1273_v8  ;;  %v1492_v22 = vld [vmem:[#allocation8 + $0x1d8] sm:$0xff] }
 0x176   :  { %1154 = vmatpush.msra.mxu0 %v3334_v32  ;;  %1350 = vmatpush.msra.mxu3 %v3334_v32  ;;  %v3497_v52 = vand.u32 4294901760, %v1492_v22 }
 0x177   :  { %1310 = vmatpush.msra.mxu2 %v3364_v37  ;;  %1245 = vmatpush.msra.mxu1 %v1244_v59 }
 0x178   :  { %1156 = vmatpush.msra.mxu0 %v3342_v15  ;;  %1352 = vmatpush.msra.mxu3 %v3342_v15 }
 0x179   :  { %1313 = vmatpush.msra.mxu2 %v3377_v61  ;;  %1251 = vmatpush.msra.mxu1 %v1250_v60  ;;  %v1493_v61 = vld [vmem:[#allocation8 + $0x1e0] sm:$0xff] }
 0x17a   :  { %1158 = vmatpush.msra.mxu0 %v3354_v6  ;;  %1354 = vmatpush.msra.mxu3 %v3354_v6 }
 0x17b   :  { %1316 = vmatpush.msra.mxu2 %v3388_v20  ;;  %1257 = vmatpush.msra.mxu1 %v1256_v27 }
 0x17c   :  { %1160 = vmatpush.msra.mxu0 %v3368_v40  ;;  %1356 = vmatpush.msra.mxu3 %v3368_v40 }
 0x17d   :  { %1319 = vmatpush.msra.mxu2 %v3400_v51  ;;  %1263 = vmatpush.msra.mxu1 %v1262_v44  ;;  %v1489_v44 = vld [vmem:[#allocation8 + $0x1c0] sm:$0xff] }
 0x17e   :  { %1162 = vmatpush.msra.mxu0 %v3379_v62  ;;  %1358 = vmatpush.msra.mxu3 %v3379_v62 }
 0x17f   :  { %1322 = vmatpush.msra.mxu2 %v1259_v2  ;;  %1269 = vmatpush.msra.mxu1 %v1268_v9 }
 0x180   :  { %1164 = vmatpush.msra.mxu0 %v3390_v24  ;;  %1360 = vmatpush.msra.mxu3 %v3390_v24 }
 0x181   :  { %1325 = vmatpush.msra.mxu2 %v1265_v26  ;;  %1275 = vmatpush.msra.mxu1 %v1274_v30 }
 0x182   :  { %1166 = vmatpush.msra.mxu0 %v3402_v56  ;;  %1362 = vmatpush.msra.mxu3 %v3402_v56 }
 0x183   :  { %1328 = vmatpush.msra.mxu2 %v1271_v34  ;;  %1444 = vmatpush.msrb.mxu1 %v3245_v41 }
 0x184   :  { %1168 = vmatpush.msra.mxu0 %v3414_v28  ;;  %1364 = vmatpush.msra.mxu3 %v3414_v28 }
 0x185   :  { %1446 = vmatpush.msrb.mxu1 %v3247_v42  ;;  %v624_v42 = vld [vmem:[#allocation9 + $0x3] sm:$0x1] }
 0x186   :  { %1170 = vmatpush.msra.mxu0 %v3418_v33  ;;  %1366 = vmatpush.msra.mxu3 %v3418_v33 }
 0x187   :  { %1448 = vmatpush.msrb.mxu1 %v3249_v43 }
 0x188   :  { %1377 = vmatpush.msrb.mxu0 %v1182_v3 }
 0x189   :  { %1450 = vmatpush.msrb.mxu1 %v3260_v57 }
 0x18a   :  { %1381 = vmatpush.msrb.mxu0 %v1188_v18 }
 0x18b   :  { %1452 = vmatpush.msrb.mxu1 %v3266_v17  ;;  %v2594_v17 = vld [vmem:[#allocation9 + $0x2] ss:$0 sm:$0xff] }
 0x18c   :  { %1385 = vmatpush.msrb.mxu0 %v1194_v55 }
 0x18d   :  { %1454 = vmatpush.msrb.mxu1 %v3273_v21 }
 0x18e   :  { %1389 = vmatpush.msrb.mxu0 %v1200_v23 }
 0x18f   :  { %1456 = vmatpush.msrb.mxu1 %v3329_v12 }
 0x190   :  { %1393 = vmatpush.msrb.mxu0 %v1206_v50 }
 0x191   :  { %1458 = vmatpush.msrb.mxu1 %v3334_v32 }
 0x192   :  { %1397 = vmatpush.msrb.mxu0 %v1212_v63 }
 0x193   :  { %1460 = vmatpush.msrb.mxu1 %v3342_v15  ;;  %v1497_v15 = vld [vmem:[#allocation8 + $0x200] sm:$0xff] }
 0x194   :  { %1401 = vmatpush.msrb.mxu0 %v1218_v13 }
 0x195   :  { %1462 = vmatpush.msrb.mxu1 %v3354_v6  ;;  %v3466_v6 = vand.u32 4294901760, %v1498_v14 }
 0x196   :  { %1405 = vmatpush.msrb.mxu0 %v1224_v29  ;;  %v1496_v29 = vld [vmem:[#allocation8 + $0x1f8] sm:$0xff] }
 0x197   :  { %1464 = vmatpush.msrb.mxu1 %v3368_v40  ;;  %v3470_v37 = vand.u32 4294901760, %v1496_v29  ;;  %v1495_v40 = vld [vmem:[#allocation8 + $0x1f0] sm:$0xff]  ;;  %v3479_v39 = vsub.f32 %v1498_v14, %v3466_v6  ;;  %1502 = vmatpush.msrb.mxu2 %v3466_v6 }
 0x198   :  { %1409 = vmatpush.msrb.mxu0 %v1230_v35  ;;  %v3468_v35 = vand.u32 4294901760, %v1497_v15 }
 0x199   :  { %1466 = vmatpush.msrb.mxu1 %v3379_v62  ;;  %v3485_v51 = vsub.f32 %v1496_v29, %v3470_v37  ;;  %v1544_v2 = vand.u32 4294901760, %v3479_v39 }
 0x19a   :  { %1413 = vmatpush.msrb.mxu0 %v1236_v46  ;;  %v1494_v46 = vld [vmem:[#allocation8 + $0x1e8] sm:$0xff]  ;;  %1504 = vmatpush.msrb.mxu2 %v3468_v35 }
 0x19b   :  { %1468 = vmatpush.msrb.mxu1 %v3390_v24  ;;  %v3474_v20 = vand.u32 4294901760, %v1494_v46  ;;  %v3476_v24 = vand.u32 4294901760, %v1493_v61  ;;  %v1556_v38 = vand.u32 4294901760, %v3485_v51  ;;  %v1545_v26 = vsub.f32 %v3479_v39, %v1544_v2 }
 0x19c   :  { %1417 = vmatpush.msrb.mxu0 %v1242_v48  ;;  %v3472_v48 = vand.u32 4294901760, %v1495_v40  ;;  %1506 = vmatpush.msrb.mxu2 %v3470_v37 }
 0x19d   :  { %1470 = vmatpush.msrb.mxu1 %v3402_v56  ;;  %v3492_v58 = vsub.f32 %v1494_v46, %v3474_v20  ;;  %v3495_v59 = vsub.f32 %v1493_v61, %v3476_v24  ;;  %v1557_v10 = vsub.f32 %v3485_v51, %v1556_v38  ;;  %v1546_v49 = vand.u32 4294901760, %v1545_v26  ;;  %v1487_v26 = vld [vmem:[#allocation8 + $0x1b0] sm:$0xff] }
 0x19e   :  { %1421 = vmatpush.msrb.mxu0 %v1248_v47  ;;  %v3482_v47 = vsub.f32 %v1497_v15, %v3468_v35  ;;  %v3489_v56 = vsub.f32 %v1495_v40, %v3472_v48  ;;  %1508 = vmatpush.msrb.mxu2 %v3472_v48 }
 0x19f   :  { %1472 = vmatpush.msrb.mxu1 %v3414_v28  ;;  %v1568_v4 = vand.u32 4294901760, %v3492_v58  ;;  %v1574_v34 = vand.u32 4294901760, %v3495_v59  ;;  %1547 = vmatpush.msrb.mxu3 %v1546_v49 }
 0x1a0   :  { %1425 = vmatpush.msrb.mxu0 %v1254_v0  ;;  %v1550_v28 = vand.u32 4294901760, %v3482_v47  ;;  %v1562_v60 = vand.u32 4294901760, %v3489_v56  ;;  %1510 = vmatpush.msrb.mxu2 %v3474_v20 }
 0x1a1   :  { %1474 = vmatpush.msrb.mxu1 %v3418_v33  ;;  %v1491_v33 = vld [vmem:[#allocation8 + $0x1d0] sm:$0xff] }
 0x1a2   :  { %1429 = vmatpush.msrb.mxu0 %v1260_v16  ;;  %v3506_v16 = vsub.f32 %v1492_v22, %v3497_v52  ;;  %v1551_v27 = vsub.f32 %v3482_v47, %v1550_v28  ;;  %v1563_v9 = vsub.f32 %v3489_v56, %v1562_v60  ;;  %v3523_v30 = vand.u32 4294901760, %v1491_v33  ;;  %1512 = vmatpush.msrb.mxu2 %v3476_v24 }
 0x1a4   :  { %1433 = vmatpush.msrb.mxu0 %v1266_v7  ;;  %v1490_v7 = vld [vmem:[#allocation8 + $0x1c8] sm:$0xff]  ;;  %v1552_v8 = vand.u32 4294901760, %v1551_v27  ;;  %1514 = vmatpush.msrb.mxu2 %v3497_v52  ;;  %v3598_v27 = vand.u32 4294901760, %v1487_v26 }
 0x1a6   :  { %1437 = vmatpush.msrb.mxu0 %v1272_v45  ;;  %v1488_v45 = vld [vmem:[#allocation8 + $0x1b8] sm:$0xff]  ;;  %1553 = vmatpush.msrb.mxu3 %v1552_v8 }
 0x1a7   :  { %1516 = vmatpush.msrb.mxu2 %v3523_v30 }
 0x1d4   :  { %v764_v41 = vpop.f32.mrf.mxu1 }
 0x1dc   :  { %v663_v43 = vpop.f32.mrf.mxu0  ;;  %v818_v53 = vpop.f32.mrf.mxu2 }
 0x1dd   :  { %v664_v54 = vadd.f32 %v663_v43, %v624_v42  ;;  %v963_v18 = vpop.f32.mrf.mxu1  ;;  %v1569_v42 = vsub.f32 %v3492_v58, %v1568_v4  ;;  %v1580_v43 = vand.u32 4294901760, %v3506_v16 }
 0x1de   :  { %v857_v57 = vpop.f32.mrf.mxu3 }
 0x1df   :  { %v765_v3 = vadd.f32 %v764_v41, %v664_v54  ;;  %v1558_v41 = vand.u32 4294901760, %v1557_v10  ;;  %v3533_v54 = vand.u32 4294901760, %v1490_v7  ;;  %v1486_v10 = vld [vmem:[#allocation8 + $0x1a8] sm:$0xff] }
 0x1e1   :  { %v819_v5 = vadd.f32 %v818_v53, %v765_v3  ;;  %v3530_v53 = vsub.f32 %v1491_v33, %v3523_v30  ;;  %v3537_v3 = vand.u32 4294901760, %v1488_v45  ;;  %1559 = vmatpush.msrb.mxu3 %v1558_v41  ;;  %1518 = vmatpush.msrb.mxu2 %v3533_v54  ;;  %v1484_v41 = vld [vmem:[#allocation8 + $0x198] sm:$0xff] }
 0x1e3   :  { %v858_v19 = vadd.f32 %v857_v57, %v819_v5  ;;  %v3535_v57 = vand.u32 4294901760, %v1489_v44  ;;  %v1575_v5 = vsub.f32 %v3495_v59, %v1574_v34 }
 0x1e4   :  { %v926_v21 = vpop.f32.mrf.mxu0  ;;  %v998_v55 = vpop.f32.mrf.mxu2 }
 0x1e5   :  { %v927_v11 = vadd.f32 %v926_v21, %v858_v19  ;;  %v999_v23 = vadd.f32 %v2594_v17, %v998_v55  ;;  %v1072_v31 = vpop.f32.mrf.mxu1  ;;  %v1586_v19 = vand.u32 4294901760, %v3530_v53  ;;  %v3544_v21 = vsub.f32 %v1490_v7, %v3533_v54  ;;  %1520 = vmatpush.msrb.mxu2 %v3535_v57 }
 0x1e6   :  { %v1024_v25 = vpop.f32.mrf.mxu3  ;;  %v3548_v55 = vsub.f32 %v1489_v44, %v3535_v57  ;;  %v3601_v7 = vsub.f32 %v1487_v26, %v3598_v27  ;;  %v3603_v44 = vand.u32 4294901760, %v1486_v10 }
 0x1e7   :  { %v964_v50 = vadd.f32 %v963_v18, %v927_v11  ;;  %v1025_v63 = vadd.f32 %v1024_v25, %v999_v23  ;;  %v1564_v18 = vand.u32 4294901760, %v1563_v9  ;;  %v1570_v23 = vand.u32 4294901760, %v1569_v42  ;;  %1522 = vmatpush.msrb.mxu2 %v3537_v3 }
 0x1e8   :  { %v1581_v25 = vsub.f32 %v3506_v16, %v1580_v43  ;;  %v1610_v49 = vand.u32 4294901760, %v3601_v7  ;;  %v1615_v8 = vsub.f32 %v1486_v10, %v3603_v44 }
 0x1e9   :  { %966 = vst [vmem:[#allocation2] sm:$0x1] %v964_v50  ;;  %v1592_v50 = vand.u32 4294901760, %v3544_v21  ;;  %1565 = vmatpush.msrb.mxu3 %v1564_v18  ;;  %1524 = vmatpush.msrb.mxu2 %v3598_v27  ;;  %v1529_v18 = vand.u32 4294901760, %v1484_v41 }
 0x1ea   :  { %v1582_v15 = vand.u32 4294901760, %v1581_v25  ;;  %v1611_v42 = vsub.f32 %v3601_v7, %v1610_v49 }
 0x1eb   :  { %1571 = vmatpush.msrb.mxu3 %v1570_v23  ;;  %v1593_v29 = vsub.f32 %v3544_v21, %v1592_v50  ;;  %1526 = vmatpush.msrb.mxu2 %v3603_v44 }
 0x1ec   :  { %v1048_v12 = vpop.f32.mrf.mxu0  ;;  %v1096_v13 = vpop.f32.mrf.mxu2  ;;  %v1612_v23 = vand.u32 4294901760, %v1611_v42  ;;  %v1851_v42 = vld [vmem:[#allocation8 + $0x248] sm:$0xff] }
 0x1ed   :  { %v1049_v32 = vadd.f32 %v1048_v12, %v1025_v63  ;;  %v3556_v63 = vsub.f32 %v1488_v45, %v3537_v3  ;;  %v1594_v22 = vand.u32 4294901760, %v1593_v29  ;;  %v1485_v45 = vld [vmem:[#allocation8 + $0x1a0] sm:$0xff] }
 0x1ee   :  { %v1118_v62 = vpop.f32.mrf.mxu3  ;;  %v3609_v9 = vand.u32 4294901760, %v1485_v45 }
 0x1ef   :  { %v1073_v1 = vadd.f32 %v1072_v31, %v1049_v32  ;;  %v1576_v31 = vand.u32 4294901760, %v1575_v5  ;;  %v1587_v32 = vsub.f32 %v3530_v53, %v1586_v19  ;;  %v1616_v5 = vand.u32 4294901760, %v1615_v8 }
 0x1f0   :  { %1528 = vmatpush.msrb.mxu2 %v3609_v9 }
 0x1f1   :  { %v1097_v36 = vadd.f32 %v1096_v13, %v1073_v1  ;;  %v1598_v13 = vand.u32 4294901760, %v3548_v55  ;;  %v1604_v1 = vand.u32 4294901760, %v3556_v63  ;;  %1577 = vmatpush.msrb.mxu3 %v1576_v31  ;;  %v1588_v46 = vand.u32 4294901760, %v1587_v32 }
 0x1f2   :  { %v1617_v25 = vsub.f32 %v1615_v8, %v1616_v5  ;;  %v1627_v31 = vsub.f32 %v1484_v41, %v1529_v18  ;;  %1530 = vmatpush.msrb.mxu2 %v1529_v18 }
 0x1f3   :  { %v1119_v0 = vadd.f32 %v1118_v62, %v1097_v36  ;;  %v1599_v61 = vsub.f32 %v3548_v55, %v1598_v13  ;;  %1583 = vmatpush.msrb.mxu3 %v1582_v15  ;;  %v1605_v36 = vsub.f32 %v3556_v63, %v1604_v1 }
 0x1f4   :  { %v1628_v29 = vand.u32 4294901760, %v1627_v31 }
 0x1f5   :  { %2601 = vtanh.f32 %v1119_v0  ;;  %1589 = vmatpush.msrb.mxu3 %v1588_v46  ;;  %v1600_v0 = vand.u32 4294901760, %v1599_v61  ;;  %v1606_v33 = vand.u32 4294901760, %v1605_v36 }
 0x1f6   :  { %v1629_v61 = vsub.f32 %v1627_v31, %v1628_v29 }
 0x1f7   :  { %1595 = vmatpush.msrb.mxu3 %v1594_v22 }
 0x1f8   :  { %v1630_v22 = vand.u32 4294901760, %v1629_v61 }
 0x1f9   :  { %1601 = vmatpush.msrb.mxu3 %v1600_v0 }
 0x1fb   :  { %v2602_v17 = vpop.eup %2601  ;;  %1607 = vmatpush.msrb.mxu3 %v1606_v33 }
 0x1fc   :  { %v1171_v11 = vand.u32 4294901760, %v2602_v17 }
 0x1fd   :  { %1613 = vmatpush.msrb.mxu3 %v1612_v23 }
 0x1fe   :  { %1277 = vmatmul.f32.vlgmr.msra.gmra.mxu1 %v1171_v11  ;;  %v1172_v12 = vsub.f32 %v2602_v17, %v1171_v11  ;;  %v1621_v17 = vsub.f32 %v1485_v45, %v3609_v9  ;;  %v1852_v45 = vld [vmem:[#allocation8 + $0x250] sm:$0xff] }
 0x1ff   :  { %1698 = vmatpush.msra.mxu1 %v3466_v6 }
 0x200   :  { %1331 = vmatmul.f32.vlgmr.msra.gmra.mxu2 %v1172_v12  ;;  %v1173_v14 = vand.u32 4294901760, %v1172_v12 }
 0x201   :  { %1700 = vmatpush.msra.mxu1 %v3468_v35 }
 0x202   :  { %1370 = vmatmul.f32.vlgmr.msra.gmra.mxu3 %v1173_v14  ;;  %v1174_v40 = vsub.f32 %v1172_v12, %v1173_v14  ;;  %v1622_v12 = vand.u32 4294901760, %v1621_v17  ;;  %v1618_v14 = vand.u32 4294901760, %v1617_v25 }
 0x203   :  { %1702 = vmatpush.msra.mxu1 %v3470_v37 }
 0x204   :  { %v1175_v62 = vand.u32 4294901760, %v1174_v40  ;;  %v1623_v15 = vsub.f32 %v1621_v17, %v1622_v12  ;;  %1619 = vmatpush.msrb.mxu3 %v1618_v14 }
 0x205   :  { %1704 = vmatpush.msra.mxu1 %v3472_v48 }
 0x206   :  { %1176 = vmatmul.f32.vlgmr.msra.gmra.mxu0 %v1175_v62  ;;  %1476 = vmatmul.f32.vlgmr.msrb.gmra.mxu1 %v1171_v11  ;;  %v1624_v46 = vand.u32 4294901760, %v1623_v15 }
 0x207   :  { %1645 = vmatpush.msra.mxu0 %v3479_v39  ;;  %1706 = vmatpush.msra.mxu1 %v3474_v20 }
 0x208   :  { %1625 = vmatpush.msrb.mxu3 %v1624_v46 }
 0x209   :  { %1648 = vmatpush.msra.mxu0 %v3482_v47  ;;  %1708 = vmatpush.msra.mxu1 %v3476_v24 }
 0x20a   :  { %1631 = vmatpush.msrb.mxu3 %v1630_v22 }
 0x20b   :  { %1651 = vmatpush.msra.mxu0 %v3485_v51  ;;  %1710 = vmatpush.msra.mxu1 %v3497_v52  ;;  %v1859_v51 = vld [vmem:[#allocation8 + $0x288] sm:$0xff] }
 0x20d   :  { %1654 = vmatpush.msra.mxu0 %v3489_v56  ;;  %1712 = vmatpush.msra.mxu1 %v3523_v30  ;;  %v1858_v56 = vld [vmem:[#allocation8 + $0x280] sm:$0xff] }
 0x20e   :  { %1439 = vmatmul.f32.vlgmr.msrb.gmra.mxu0 %v1171_v11  ;;  %v1483_v11 = vld [vmem:[#allocation8 + $0x190] sm:$0xff] }
 0x20f   :  { %1657 = vmatpush.msra.mxu0 %v3492_v58  ;;  %1714 = vmatpush.msra.mxu1 %v3533_v54  ;;  %v1531_v32 = vand.u32 4294901760, %v1483_v11  ;;  %v1857_v58 = vld [vmem:[#allocation8 + $0x278] sm:$0xff] }
 0x211   :  { %1660 = vmatpush.msra.mxu0 %v3495_v59  ;;  %1716 = vmatpush.msra.mxu1 %v3535_v57  ;;  %v1633_v40 = vsub.f32 %v1483_v11, %v1531_v32  ;;  %v3711_v11 = vand.u32 4294901760, %v1852_v45 }
 0x212   :  { %1532 = vmatpush.msrb.mxu2 %v1531_v32 }
 0x213   :  { %1663 = vmatpush.msra.mxu0 %v3506_v16  ;;  %1718 = vmatpush.msra.mxu1 %v3537_v3  ;;  %v1634_v62 = vand.u32 4294901760, %v1633_v40 }
 0x214   :  { %1739 = vmatpush.msra.mxu2 %v1544_v2  ;;  %v3656_v2 = vand.u32 4294901760, %v1858_v56 }
 0x215   :  { %1666 = vmatpush.msra.mxu0 %v3530_v53  ;;  %1720 = vmatpush.msra.mxu1 %v3598_v27  ;;  %v1635_v36 = vsub.f32 %v1633_v40, %v1634_v62  ;;  %v1853_v53 = vld [vmem:[#allocation8 + $0x258] sm:$0xff] }
 0x216   :  { %1743 = vmatpush.msra.mxu2 %v1550_v28  ;;  %v3658_v28 = vand.u32 4294901760, %v1857_v58 }
 0x217   :  { %1669 = vmatpush.msra.mxu0 %v3544_v21  ;;  %1722 = vmatpush.msra.mxu1 %v3603_v44  ;;  %v1636_v0 = vand.u32 4294901760, %v1635_v36 }
 0x218   :  { %1747 = vmatpush.msra.mxu2 %v1556_v38  ;;  %v1856_v38 = vld [vmem:[#allocation8 + $0x270] sm:$0xff]  ;;  %v3673_v21 = vsub.f32 %v1857_v58, %v3658_v28 }
 0x219   :  { %1672 = vmatpush.msra.mxu0 %v3548_v55  ;;  %1724 = vmatpush.msra.mxu1 %v3609_v9 }
 0x21a   :  { %1751 = vmatpush.msra.mxu2 %v1562_v60  ;;  %1637 = vmatpush.msrb.mxu3 %v1636_v0  ;;  %v1855_v60 = vld [vmem:[#allocation8 + $0x268] sm:$0xff] }
 0x21b   :  { %1675 = vmatpush.msra.mxu0 %v3556_v63  ;;  %1726 = vmatpush.msra.mxu1 %v1529_v18 }
 0x21c   :  { %1806 = vmatpush.msra.mxu3 %v3466_v6  ;;  %1755 = vmatpush.msra.mxu2 %v1568_v4  ;;  %v1854_v4 = vld [vmem:[#allocation8 + $0x260] sm:$0xff] }
 0x21d   :  { %1678 = vmatpush.msra.mxu0 %v3601_v7  ;;  %1728 = vmatpush.msra.mxu1 %v1531_v32 }
 0x21e   :  { %1808 = vmatpush.msra.mxu3 %v3468_v35  ;;  %1759 = vmatpush.msra.mxu2 %v1574_v34  ;;  %v3660_v34 = vand.u32 4294901760, %v1856_v38 }
 0x21f   :  { %1681 = vmatpush.msra.mxu0 %v1615_v8 }
 0x220   :  { %1810 = vmatpush.msra.mxu3 %v3470_v37  ;;  %1763 = vmatpush.msra.mxu2 %v1580_v43  ;;  %v3664_v43 = vand.u32 4294901760, %v1854_v4  ;;  %v3677_v55 = vsub.f32 %v1856_v38, %v3660_v34 }
 0x221   :  { %1684 = vmatpush.msra.mxu0 %v1621_v17 }
 0x222   :  { %1812 = vmatpush.msra.mxu3 %v3472_v48  ;;  %1767 = vmatpush.msra.mxu2 %v1586_v19  ;;  %v3670_v19 = vsub.f32 %v1858_v56, %v3656_v2  ;;  %v3683_v63 = vsub.f32 %v1854_v4, %v3664_v43  ;;  %v1923_v10 = vand.u32 4294901760, %v3677_v55  ;;  %v1850_v56 = vld [vmem:[#allocation8 + $0x240] sm:$0xff]  ;;  %v1848_v4 = vld [vmem:[#allocation8 + $0x230] sm:$0xff] }
 0x223   :  { %1687 = vmatpush.msra.mxu0 %v1627_v31  ;;  %v3718_v31 = vsub.f32 %v1852_v45, %v3711_v11  ;;  %v3766_v58 = vand.u32 4294901760, %v1850_v56 }
 0x224   :  { %1814 = vmatpush.msra.mxu3 %v3474_v20  ;;  %1771 = vmatpush.msra.mxu2 %v1592_v50  ;;  %v1911_v26 = vand.u32 4294901760, %v3670_v19  ;;  %v1935_v41 = vand.u32 4294901760, %v3683_v63 }
 0x225   :  { %1690 = vmatpush.msra.mxu0 %v1633_v40  ;;  %v1947_v40 = vand.u32 4294901760, %v3718_v31  ;;  %v3769_v38 = vsub.f32 %v1850_v56, %v3766_v58 }
 0x226   :  { %1816 = vmatpush.msra.mxu3 %v3476_v24  ;;  %1775 = vmatpush.msra.mxu2 %v1598_v13  ;;  %v3685_v13 = vand.u32 4294901760, %v1853_v53  ;;  %v1912_v8 = vsub.f32 %v3670_v19, %v1911_v26 }
 0x228   :  { %1818 = vmatpush.msra.mxu3 %v3497_v52  ;;  %1779 = vmatpush.msra.mxu2 %v1604_v1  ;;  %v3654_v52 = vand.u32 4294901760, %v1859_v51  ;;  %v1913_v17 = vand.u32 4294901760, %v1912_v8 }
 0x22a   :  { %1820 = vmatpush.msra.mxu3 %v3523_v30  ;;  %1783 = vmatpush.msra.mxu2 %v1610_v49  ;;  %v3662_v30 = vand.u32 4294901760, %v1855_v60 }
 0x22b   :  { %1863 = vmatpush.msrb.mxu0 %v3654_v52 }
 0x22c   :  { %1822 = vmatpush.msra.mxu3 %v3533_v54  ;;  %1787 = vmatpush.msra.mxu2 %v1616_v5  ;;  %v3680_v50 = vsub.f32 %v1855_v60, %v3662_v30 }
 0x22d   :  { %1865 = vmatpush.msrb.mxu0 %v3656_v2 }
 0x22e   :  { %1824 = vmatpush.msra.mxu3 %v3535_v57  ;;  %1791 = vmatpush.msra.mxu2 %v1622_v12  ;;  %v2595_v57 = vld [vmem:[#allocation2] ss:$0 sm:$0xff]  ;;  %v1929_v7 = vand.u32 4294901760, %v3680_v50 }
 0x22f   :  { %1867 = vmatpush.msrb.mxu0 %v3658_v28 }
 0x230   :  { %1826 = vmatpush.msra.mxu3 %v3537_v3  ;;  %1795 = vmatpush.msra.mxu2 %v1628_v29  ;;  %v3667_v3 = vsub.f32 %v1859_v51, %v3654_v52  ;;  %v1930_v23 = vsub.f32 %v3680_v50, %v1929_v7  ;;  %v1936_v29 = vsub.f32 %v3683_v63, %v1935_v41 }
 0x231   :  { %1869 = vmatpush.msrb.mxu0 %v3660_v34 }
 0x232   :  { %1828 = vmatpush.msra.mxu3 %v3598_v27  ;;  %1799 = vmatpush.msra.mxu2 %v1634_v62  ;;  %v1905_v33 = vand.u32 4294901760, %v3667_v3  ;;  %v1917_v27 = vand.u32 4294901760, %v3673_v21  ;;  %v1931_v62 = vand.u32 4294901760, %v1930_v23 }
 0x233   :  { %1871 = vmatpush.msrb.mxu0 %v3662_v30 }
 0x234   :  { %1830 = vmatpush.msra.mxu3 %v3603_v44  ;;  %v3694_v44 = vsub.f32 %v1853_v53, %v3685_v13  ;;  %v1906_v49 = vsub.f32 %v3667_v3, %v1905_v33 }
 0x235   :  { %1873 = vmatpush.msrb.mxu0 %v3664_v43 }
 0x236   :  { %1832 = vmatpush.msra.mxu3 %v3609_v9  ;;  %v1918_v9 = vsub.f32 %v3673_v21, %v1917_v27  ;;  %v1907_v5 = vand.u32 4294901760, %v1906_v49  ;;  %v1941_v12 = vand.u32 4294901760, %v3694_v44 }
 0x237   :  { %1875 = vmatpush.msrb.mxu0 %v3685_v13 }
 0x238   :  { %1834 = vmatpush.msra.mxu3 %v1529_v18  ;;  %v1924_v18 = vsub.f32 %v3677_v55, %v1923_v10  ;;  %1908 = vmatpush.msrb.mxu1 %v1907_v5  ;;  %v1919_v25 = vand.u32 4294901760, %v1918_v9  ;;  %v1942_v22 = vsub.f32 %v3694_v44, %v1941_v12  ;;  %v1846_v9 = vld [vmem:[#allocation8 + $0x220] sm:$0xff] }
 0x239   :  { %1877 = vmatpush.msrb.mxu0 %v3711_v11  ;;  %v3805_v23 = vand.u32 4294901760, %v1846_v9 }
 0x23a   :  { %1836 = vmatpush.msra.mxu3 %v1531_v32  ;;  %v3721_v32 = vand.u32 4294901760, %v1851_v42  ;;  %1914 = vmatpush.msrb.mxu1 %v1913_v17  ;;  %v1925_v15 = vand.u32 4294901760, %v1924_v18 }
 0x23c   :  { %v3730_v46 = vsub.f32 %v1851_v42, %v3721_v32  ;;  %1920 = vmatpush.msrb.mxu1 %v1919_v25  ;;  %1879 = vmatpush.msrb.mxu0 %v3721_v32  ;;  %v1845_v25 = vld [vmem:[#allocation8 + $0x218] sm:$0xff] }
 0x23e   :  { %v1953_v36 = vand.u32 4294901760, %v3730_v46  ;;  %1926 = vmatpush.msrb.mxu1 %v1925_v15  ;;  %1881 = vmatpush.msrb.mxu0 %v3766_v58 }
 0x240   :  { %1932 = vmatpush.msrb.mxu1 %v1931_v62  ;;  %v3812_v62 = vand.u32 4294901760, %v1845_v25 }
 0x27b   :  { %v1278_v6 = vpop.f32.mrf.mxu1 }
 0x283   :  { %v1177_v35 = vpop.f32.mrf.mxu0  ;;  %v1332_v48 = vpop.f32.mrf.mxu2 }
 0x284   :  { %v1279_v37 = vadd.f32 %v1278_v6, %v1177_v35  ;;  %v1477_v16 = vpop.f32.mrf.mxu1  ;;  %v1937_v6 = vand.u32 4294901760, %v1936_v29  ;;  %v1948_v35 = vsub.f32 %v3718_v31, %v1947_v40 }
 0x285   :  { %v1371_v24 = vpop.f32.mrf.mxu3 }
 0x286   :  { %v1333_v20 = vadd.f32 %v1332_v48, %v1279_v37  ;;  %v1943_v48 = vand.u32 4294901760, %v1942_v22  ;;  %1938 = vmatpush.msrb.mxu1 %v1937_v6  ;;  %v1982_v22 = vsub.f32 %v1846_v9, %v3805_v23 }
 0x288   :  { %v1372_v39 = vadd.f32 %v1371_v24, %v1333_v20  ;;  %v1954_v20 = vsub.f32 %v3730_v46, %v1953_v36  ;;  %1944 = vmatpush.msrb.mxu1 %v1943_v48 }
 0x28a   :  { %v1955_v51 = vand.u32 4294901760, %v1954_v20  ;;  %v1983_v20 = vand.u32 4294901760, %v1982_v22 }
 0x28b   :  { %v1440_v47 = vpop.f32.mrf.mxu0 }
 0x28c   :  { %v1441_v59 = vadd.f32 %v1440_v47, %v1372_v39  ;;  %v1949_v39 = vand.u32 4294901760, %v1948_v35 }
 0x28e   :  { %v1478_v54 = vadd.f32 %v1477_v16, %v1441_v59  ;;  %1950 = vmatpush.msrb.mxu1 %v1949_v39  ;;  %v1849_v59 = vld [vmem:[#allocation8 + $0x238] sm:$0xff]  ;;  %v1959_v16 = vand.u32 4294901760, %v3769_v38 }
 0x28f   :  { %v3771_v60 = vand.u32 4294901760, %v1849_v59 }
 0x290   :  { %v1481_v1 = vadd.f32 %v2595_v57, %v1478_v54  ;;  %1956 = vmatpush.msrb.mxu1 %v1955_v51  ;;  %v3779_v54 = vand.u32 4294901760, %v1848_v4  ;;  %v1847_v57 = vld [vmem:[#allocation8 + $0x228] sm:$0xff]  ;;  %v1984_v51 = vsub.f32 %v1982_v22, %v1983_v20 }
 0x291   :  { %v3777_v53 = vsub.f32 %v1849_v59, %v3771_v60  ;;  %1883 = vmatpush.msrb.mxu0 %v3771_v60  ;;  %v3791_v8 = vand.u32 4294901760, %v1847_v57 }
 0x292   :  { %2603 = vtanh.f32 %v1481_v1  ;;  %v1960_v1 = vsub.f32 %v3769_v38, %v1959_v16  ;;  %v3789_v49 = vsub.f32 %v1848_v4, %v3779_v54  ;;  %v1985_v4 = vand.u32 4294901760, %v1984_v51 }
 0x293   :  { %v1965_v45 = vand.u32 4294901760, %v3777_v53  ;;  %1885 = vmatpush.msrb.mxu0 %v3779_v54  ;;  %v3801_v18 = vsub.f32 %v1847_v57, %v3791_v8 }
 0x294   :  { %v1961_v42 = vand.u32 4294901760, %v1960_v1  ;;  %v1971_v17 = vand.u32 4294901760, %v3789_v49 }
 0x295   :  { %v1966_v5 = vsub.f32 %v3777_v53, %v1965_v45  ;;  %1887 = vmatpush.msrb.mxu0 %v3791_v8 }
 0x296   :  { %1962 = vmatpush.msrb.mxu1 %v1961_v42  ;;  %v1972_v29 = vsub.f32 %v3789_v49, %v1971_v17 }
 0x297   :  { %v1967_v15 = vand.u32 4294901760, %v1966_v5  ;;  %1889 = vmatpush.msrb.mxu0 %v3805_v23 }
 0x298   :  { %v3723_v14 = vpop.eup %2603  ;;  %v1973_v6 = vand.u32 4294901760, %v1972_v29 }
 0x299   :  { %v1533_v61 = vand.u32 4294901760, %v3723_v14  ;;  %1968 = vmatpush.msrb.mxu1 %v1967_v15  ;;  %1891 = vmatpush.msrb.mxu0 %v3812_v62 }
 0x29b   :  { %1639 = vmatmul.f32.vlgmr.msrb.gmra.mxu3 %v1533_v61  ;;  %v1534_v0 = vsub.f32 %v3723_v14, %v1533_v61  ;;  %1974 = vmatpush.msrb.mxu1 %v1973_v6 }
 0x29c   :  { %2059 = vmatpush.msrb.mxu3 %v3654_v52 }
 0x29d   :  { %1693 = vmatmul.f32.vlgmr.msra.gmra.mxu0 %v1534_v0  ;;  %v1535_v37 = vand.u32 4294901760, %v1534_v0 }
 0x29e   :  { %2061 = vmatpush.msrb.mxu3 %v3656_v2 }
 0x29f   :  { %1732 = vmatmul.f32.vlgmr.msra.gmra.mxu1 %v1535_v37  ;;  %v1536_v24 = vsub.f32 %v1534_v0, %v1535_v37  ;;  %v1844_v0 = vld [vmem:[#allocation8 + $0x210] sm:$0xff]  ;;  %v1988_v37 = vsub.f32 %v1845_v25, %v3812_v62 }
 0x2a0   :  { %2063 = vmatpush.msrb.mxu3 %v3658_v28  ;;  %v1892_v48 = vand.u32 4294901760, %v1844_v0 }
 0x2a1   :  { %v1537_v47 = vand.u32 4294901760, %v1536_v24  ;;  %v1989_v39 = vand.u32 4294901760, %v1988_v37 }
 0x2a2   :  { %2065 = vmatpush.msrb.mxu3 %v3660_v34  ;;  %1893 = vmatpush.msrb.mxu0 %v1892_v48 }
 0x2a3   :  { %1538 = vmatmul.f32.vlgmr.msrb.gmra.mxu2 %v1537_v47  ;;  %1838 = vmatmul.f32.vlgmr.msra.gmra.mxu3 %v1533_v61  ;;  %v1994_v47 = vsub.f32 %v1844_v0, %v1892_v48  ;;  %v1990_v56 = vsub.f32 %v1988_v37, %v1989_v39  ;;  %v2210_v0 = vld [vmem:[#allocation8 + $0x2b8] sm:$0xff] }
 0x2a4   :  { %2006 = vmatpush.msrb.mxu2 %v3667_v3  ;;  %2067 = vmatpush.msrb.mxu3 %v3662_v30 }
 0x2a5   :  { %v1995_v59 = vand.u32 4294901760, %v1994_v47  ;;  %2100 = vmatpush.msra.mxu0 %v1905_v33  ;;  %v1991_v57 = vand.u32 4294901760, %v1990_v56 }
 0x2a6   :  { %2009 = vmatpush.msrb.mxu2 %v3670_v19  ;;  %2069 = vmatpush.msrb.mxu3 %v3664_v43 }
 0x2a7   :  { %v1996_v1 = vsub.f32 %v1994_v47, %v1995_v59  ;;  %2104 = vmatpush.msra.mxu0 %v1911_v26 }
 0x2a8   :  { %2012 = vmatpush.msrb.mxu2 %v3673_v21  ;;  %2071 = vmatpush.msrb.mxu3 %v3685_v13 }
 0x2a9   :  { %v1997_v9 = vand.u32 4294901760, %v1996_v1  ;;  %2108 = vmatpush.msra.mxu0 %v1917_v27 }
 0x2aa   :  { %2015 = vmatpush.msrb.mxu2 %v3677_v55  ;;  %2073 = vmatpush.msrb.mxu3 %v3711_v11 }
 0x2ab   :  { %1801 = vmatmul.f32.vlgmr.msra.gmra.mxu2 %v1533_v61  ;;  %v1977_v61 = vand.u32 4294901760, %v3801_v18  ;;  %2112 = vmatpush.msra.mxu0 %v1923_v10 }
 0x2ac   :  { %2018 = vmatpush.msrb.mxu2 %v3680_v50  ;;  %2075 = vmatpush.msrb.mxu3 %v3721_v32  ;;  %v2220_v50 = vld [vmem:[#allocation8 + $0x308] sm:$0xff] }
 0x2ad   :  { %v1978_v35 = vsub.f32 %v3801_v18, %v1977_v61  ;;  %2116 = vmatpush.msra.mxu0 %v1929_v7  ;;  %v3861_v26 = vand.u32 4294901760, %v2220_v50  ;;  %v2217_v7 = vld [vmem:[#allocation8 + $0x2f0] sm:$0xff] }
 0x2ae   :  { %2021 = vmatpush.msrb.mxu2 %v3683_v63  ;;  %2077 = vmatpush.msrb.mxu3 %v3766_v58  ;;  %v2219_v63 = vld [vmem:[#allocation8 + $0x300] sm:$0xff] }
 0x2af   :  { %v1979_v24 = vand.u32 4294901760, %v1978_v35  ;;  %2120 = vmatpush.msra.mxu0 %v1935_v41  ;;  %v3863_v27 = vand.u32 4294901760, %v2219_v63  ;;  %v2215_v41 = vld [vmem:[#allocation8 + $0x2e0] sm:$0xff] }
 0x2b0   :  { %2024 = vmatpush.msrb.mxu2 %v3694_v44  ;;  %2079 = vmatpush.msrb.mxu3 %v3771_v60  ;;  %v2216_v44 = vld [vmem:[#allocation8 + $0x2e8] sm:$0xff] }
 0x2b1   :  { %1980 = vmatpush.msrb.mxu1 %v1979_v24  ;;  %2124 = vmatpush.msra.mxu0 %v1941_v12  ;;  %v3867_v12 = vand.u32 4294901760, %v2217_v7 }
 0x2b2   :  { %2027 = vmatpush.msrb.mxu2 %v3718_v31  ;;  %2081 = vmatpush.msrb.mxu3 %v3779_v54  ;;  %v3869_v31 = vand.u32 4294901760, %v2216_v44 }
 0x2b3   :  { %1986 = vmatpush.msrb.mxu1 %v1985_v4  ;;  %2128 = vmatpush.msra.mxu0 %v1947_v40  ;;  %v2214_v40 = vld [vmem:[#allocation8 + $0x2d8] sm:$0xff] }
 0x2b4   :  { %2030 = vmatpush.msrb.mxu2 %v3730_v46  ;;  %2083 = vmatpush.msrb.mxu3 %v3791_v8 }
 0x2b5   :  { %1992 = vmatpush.msrb.mxu1 %v1991_v57  ;;  %2132 = vmatpush.msra.mxu0 %v1953_v36  ;;  %v3874_v36 = vsub.f32 %v2220_v50, %v3861_v26 }
 0x2b6   :  { %2033 = vmatpush.msrb.mxu2 %v3769_v38  ;;  %2085 = vmatpush.msrb.mxu3 %v3805_v23 }
 0x2b7   :  { %1998 = vmatpush.msrb.mxu1 %v1997_v9  ;;  %2136 = vmatpush.msra.mxu0 %v1959_v16  ;;  %v3887_v16 = vsub.f32 %v2216_v44, %v3869_v31 }
 0x2b8   :  { %2036 = vmatpush.msrb.mxu2 %v3777_v53  ;;  %2087 = vmatpush.msrb.mxu3 %v3812_v62 }
 0x2b9   :  { %2167 = vmatpush.msra.mxu1 %v3654_v52  ;;  %2140 = vmatpush.msra.mxu0 %v1965_v45  ;;  %v2596_v52 = vld [vmem:[#allocation9 + $0x4] ss:$0 sm:$0xff] }
 0x2ba   :  { %2039 = vmatpush.msrb.mxu2 %v3789_v49  ;;  %2089 = vmatpush.msrb.mxu3 %v1892_v48  ;;  %v2213_v45 = vld [vmem:[#allocation8 + $0x2d0] sm:$0xff]  ;;  %v2266_v49 = vand.u32 4294901760, %v3874_v36 }
 0x2bb   :  { %2169 = vmatpush.msra.mxu1 %v3656_v2  ;;  %2144 = vmatpush.msra.mxu0 %v1971_v17  ;;  %v2290_v17 = vand.u32 4294901760, %v3887_v16  ;;  %v3913_v29 = vand.u32 4294901760, %v2213_v45 }
 0x2bc   :  { %2042 = vmatpush.msrb.mxu2 %v3801_v18 }
 0x2bd   :  { %2171 = vmatpush.msra.mxu1 %v3658_v28  ;;  %2148 = vmatpush.msra.mxu0 %v1977_v61 }
 0x2be   :  { %2045 = vmatpush.msrb.mxu2 %v1982_v22  ;;  %v2211_v22 = vld [vmem:[#allocation8 + $0x2c0] sm:$0xff] }
 0x2bf   :  { %2173 = vmatpush.msra.mxu1 %v3660_v34  ;;  %2152 = vmatpush.msra.mxu0 %v1983_v20  ;;  %v2291_v20 = vsub.f32 %v3887_v16, %v2290_v17  ;;  %v3930_v56 = vand.u32 4294901760, %v2211_v22 }
 0x2c0   :  { %2048 = vmatpush.msrb.mxu2 %v1988_v37 }
 0x2c1   :  { %2175 = vmatpush.msra.mxu1 %v3662_v30  ;;  %2156 = vmatpush.msra.mxu0 %v1989_v39 }
 0x2c2   :  { %2051 = vmatpush.msrb.mxu2 %v1994_v47 }
 0x2c3   :  { %2177 = vmatpush.msra.mxu1 %v3664_v43  ;;  %2160 = vmatpush.msra.mxu0 %v1995_v59  ;;  %v3932_v59 = vand.u32 4294901760, %v2210_v0 }
 0x2c4   :  { %2224 = vmatpush.msra.mxu2 %v3861_v26 }
 0x2c5   :  { %2179 = vmatpush.msra.mxu1 %v3685_v13  ;;  %v2218_v13 = vld [vmem:[#allocation8 + $0x2f8] sm:$0xff] }
 0x2c6   :  { %v3865_v10 = vand.u32 4294901760, %v2218_v13  ;;  %2226 = vmatpush.msra.mxu2 %v3863_v27 }
 0x2c7   :  { %2181 = vmatpush.msra.mxu1 %v3711_v11 }
 0x2c8   :  { %v3880_v38 = vsub.f32 %v2218_v13, %v3865_v10  ;;  %2228 = vmatpush.msra.mxu2 %v3865_v10 }
 0x2c9   :  { %2183 = vmatpush.msra.mxu1 %v3721_v32  ;;  %v3871_v32 = vand.u32 4294901760, %v2215_v41 }
 0x2ca   :  { %v2278_v42 = vand.u32 4294901760, %v3880_v38  ;;  %2230 = vmatpush.msra.mxu2 %v3867_v12 }
 0x2cb   :  { %2185 = vmatpush.msra.mxu1 %v3766_v58  ;;  %v3877_v58 = vsub.f32 %v2219_v63, %v3863_v27  ;;  %v3890_v53 = vsub.f32 %v2215_v41, %v3871_v32 }
 0x2cc   :  { %v2279_v15 = vsub.f32 %v3880_v38, %v2278_v42  ;;  %2232 = vmatpush.msra.mxu2 %v3869_v31 }
 0x2cd   :  { %2187 = vmatpush.msra.mxu1 %v3771_v60  ;;  %v3884_v60 = vsub.f32 %v2217_v7, %v3867_v12  ;;  %v2296_v61 = vand.u32 4294901760, %v3890_v53 }
 0x2ce   :  { %v2280_v47 = vand.u32 4294901760, %v2279_v15  ;;  %2234 = vmatpush.msra.mxu2 %v3871_v32 }
 0x2cf   :  { %2189 = vmatpush.msra.mxu1 %v3779_v54  ;;  %v3892_v54 = vand.u32 4294901760, %v2214_v40  ;;  %v2284_v5 = vand.u32 4294901760, %v3884_v60  ;;  %v2297_v57 = vsub.f32 %v3890_v53, %v2296_v61 }
 0x2d1   :  { %2191 = vmatpush.msra.mxu1 %v3791_v8  ;;  %v2272_v8 = vand.u32 4294901760, %v3877_v58  ;;  %v3901_v18 = vsub.f32 %v2214_v40, %v3892_v54  ;;  %v2285_v37 = vsub.f32 %v3884_v60, %v2284_v5  ;;  %2236 = vmatpush.msra.mxu2 %v3892_v54 }
 0x2d3   :  { %2193 = vmatpush.msra.mxu1 %v3805_v23  ;;  %v2267_v23 = vsub.f32 %v3874_v36, %v2266_v49  ;;  %v2273_v25 = vsub.f32 %v3877_v58, %v2272_v8  ;;  %v2302_v24 = vand.u32 4294901760, %v3901_v18  ;;  %v2286_v1 = vand.u32 4294901760, %v2285_v37  ;;  %2238 = vmatpush.msra.mxu2 %v3913_v29 }
 0x2d5   :  { %2195 = vmatpush.msra.mxu1 %v3812_v62  ;;  %v2212_v62 = vld [vmem:[#allocation8 + $0x2c8] sm:$0xff]  ;;  %v2268_v6 = vand.u32 4294901760, %v2267_v23  ;;  %v2274_v35 = vand.u32 4294901760, %v2273_v25  ;;  %v2209_v25 = vld [vmem:[#allocation8 + $0x2b0] sm:$0xff] }
 0x2d6   :  { %v3928_v51 = vand.u32 4294901760, %v2212_v62  ;;  %v3998_v15 = vand.u32 4294901760, %v2209_v25 }
 0x2d7   :  { %2197 = vmatpush.msra.mxu1 %v1892_v48  ;;  %v3921_v48 = vsub.f32 %v2213_v45, %v3913_v29  ;;  %2269 = vmatpush.msra.mxu3 %v2268_v6  ;;  %v2207_v6 = vld [vmem:[#allocation8 + $0x2a0] sm:$0xff] }
 0x2d8   :  { %2240 = vmatpush.msra.mxu2 %v3928_v51 }
 0x2d9   :  { %2275 = vmatpush.msra.mxu3 %v2274_v35  ;;  %v2308_v9 = vand.u32 4294901760, %v3921_v48 }
 0x2da   :  { %2242 = vmatpush.msra.mxu2 %v3930_v56 }
 0x2db   :  { %2281 = vmatpush.msra.mxu3 %v2280_v47 }
 0x2dc   :  { %2244 = vmatpush.msra.mxu2 %v3932_v59 }
 0x2dd   :  { %2287 = vmatpush.msra.mxu3 %v2286_v1 }
 0x2de   :  { %2246 = vmatpush.msra.mxu2 %v3998_v15 }
 0x31a   :  { %v1694_v43 = vpop.f32.mrf.mxu0 }
 0x31c   :  { %v1733_v19 = vpop.f32.mrf.mxu1 }
 0x31e   :  { %v1640_v2 = vpop.f32.mrf.mxu3 }
 0x326   :  { %v1539_v28 = vpop.f32.mrf.mxu2  ;;  %v1839_v11 = vpop.f32.mrf.mxu3 }
 0x327   :  { %v1540_v34 = vadd.f32 %v2596_v52, %v1539_v28  ;;  %v3942_v52 = vsub.f32 %v2212_v62, %v3928_v51  ;;  %v2208_v62 = vld [vmem:[#allocation8 + $0x2a8] sm:$0xff] }
 0x329   :  { %v1641_v30 = vadd.f32 %v1640_v2, %v1540_v34  ;;  %v3946_v2 = vsub.f32 %v2211_v22, %v3930_v56  ;;  %v2303_v34 = vsub.f32 %v3901_v18, %v2302_v24  ;;  %v4001_v22 = vsub.f32 %v2209_v25, %v3998_v15 }
 0x32b   :  { %v1695_v3 = vadd.f32 %v1694_v43, %v1641_v30  ;;  %v2314_v30 = vand.u32 4294901760, %v3942_v52  ;;  %v3955_v43 = vsub.f32 %v2210_v0, %v3932_v59  ;;  %v2304_v63 = vand.u32 4294901760, %v2303_v34 }
 0x32c   :  { %v4003_v0 = vand.u32 4294901760, %v2208_v62  ;;  %v2332_v35 = vand.u32 4294901760, %v4001_v22 }
 0x32d   :  { %v1734_v21 = vadd.f32 %v1733_v19, %v1695_v3  ;;  %v2298_v19 = vand.u32 4294901760, %v2297_v57  ;;  %v2315_v13 = vsub.f32 %v3942_v52, %v2314_v30 }
 0x32e   :  { %v1802_v55 = vpop.f32.mrf.mxu2  ;;  %v2337_v37 = vsub.f32 %v2208_v62, %v4003_v0  ;;  %2248 = vmatpush.msra.mxu2 %v4003_v0  ;;  %v2333_v47 = vsub.f32 %v4001_v22, %v2332_v35 }
 0x32f   :  { %v1803_v33 = vadd.f32 %v1802_v55, %v1734_v21  ;;  %v2309_v21 = vsub.f32 %v3921_v48, %v2308_v9  ;;  %v2320_v55 = vand.u32 4294901760, %v3946_v2  ;;  %v2316_v40 = vand.u32 4294901760, %v2315_v13 }
 0x330   :  { %v2338_v57 = vand.u32 4294901760, %v2337_v37  ;;  %v2334_v34 = vand.u32 4294901760, %v2333_v47 }
 0x331   :  { %v1840_v46 = vadd.f32 %v1839_v11, %v1803_v33  ;;  %v2326_v33 = vand.u32 4294901760, %v3955_v43  ;;  %v2310_v44 = vand.u32 4294901760, %v2309_v21  ;;  %v2321_v41 = vsub.f32 %v3946_v2, %v2320_v55 }
 0x333   :  { %2605 = vtanh.f32 %v1840_v46  ;;  %v2327_v46 = vsub.f32 %v3955_v43, %v2326_v33  ;;  %v2322_v45 = vand.u32 4294901760, %v2321_v41 }
 0x335   :  { %v2328_v23 = vand.u32 4294901760, %v2327_v46 }
 0x339   :  { %v2606_v39 = vpop.eup %2605 }
 0x33a   :  { %v3935_v4 = vadd.f32 %v2606_v39, %v3723_v14  ;;  %v2292_v14 = vand.u32 4294901760, %v2291_v20  ;;  %v4009_v20 = vand.u32 4294901760, %v2207_v6  ;;  %v2206_v39 = vld [vmem:[#allocation8 + $0x298] sm:$0xff] }
 0x33c   :  { %v1894_v28 = vand.u32 4294901760, %v3935_v4  ;;  %2293 = vmatpush.msra.mxu3 %v2292_v14  ;;  %v2343_v1 = vsub.f32 %v2207_v6, %v4009_v20  ;;  %2250 = vmatpush.msra.mxu2 %v4009_v20  ;;  %v2205_v14 = vld [vmem:[#allocation8 + $0x290] sm:$0xff] }
 0x33e   :  { %2000 = vmatmul.f32.vlgmr.msrb.gmra.mxu1 %v1894_v28  ;;  %v1895_v3 = vsub.f32 %v3935_v4, %v1894_v28  ;;  %2299 = vmatpush.msra.mxu3 %v2298_v19  ;;  %v2344_v19 = vand.u32 4294901760, %v2343_v1 }
 0x33f   :  { %2420 = vmatpush.msrb.mxu1 %v3861_v26 }
 0x340   :  { %2054 = vmatmul.f32.vlgmr.msrb.gmra.mxu2 %v1895_v3  ;;  %v1896_v50 = vand.u32 4294901760, %v1895_v3  ;;  %2305 = vmatpush.msra.mxu3 %v2304_v63  ;;  %v2345_v13 = vsub.f32 %v2343_v1, %v2344_v19 }
 0x341   :  { %2422 = vmatpush.msrb.mxu1 %v3863_v27 }
 0x342   :  { %2093 = vmatmul.f32.vlgmr.msrb.gmra.mxu3 %v1896_v50  ;;  %v1897_v7 = vsub.f32 %v1895_v3, %v1896_v50  ;;  %v2339_v3 = vsub.f32 %v2337_v37, %v2338_v57  ;;  %v2253_v50 = vand.u32 4294901760, %v2205_v14  ;;  %v2346_v41 = vand.u32 4294901760, %v2345_v13 }
 0x343   :  { %2424 = vmatpush.msrb.mxu1 %v3865_v10  ;;  %2311 = vmatpush.msra.mxu3 %v2310_v44 }
 0x344   :  { %v1898_v11 = vand.u32 4294901760, %v1897_v7  ;;  %v2340_v63 = vand.u32 4294901760, %v2339_v3  ;;  %v2355_v44 = vsub.f32 %v2205_v14, %v2253_v50 }
 0x345   :  { %2426 = vmatpush.msrb.mxu1 %v3867_v12  ;;  %2317 = vmatpush.msra.mxu3 %v2316_v40 }
 0x346   :  { %1899 = vmatmul.f32.vlgmr.msrb.gmra.mxu0 %v1898_v11  ;;  %2199 = vmatmul.f32.vlgmr.msra.gmra.mxu1 %v1894_v28  ;;  %v2356_v40 = vand.u32 4294901760, %v2355_v44 }
 0x347   :  { %2367 = vmatpush.msrb.mxu0 %v3874_v36  ;;  %2428 = vmatpush.msrb.mxu1 %v3869_v31 }
 0x348   :  { %2323 = vmatpush.msra.mxu3 %v2322_v45  ;;  %v2357_v45 = vsub.f32 %v2355_v44, %v2356_v40 }
 0x349   :  { %2370 = vmatpush.msrb.mxu0 %v3877_v58  ;;  %2430 = vmatpush.msrb.mxu1 %v3871_v32 }
 0x34a   :  { %2329 = vmatpush.msra.mxu3 %v2328_v23  ;;  %v2358_v23 = vand.u32 4294901760, %v2357_v45 }
 0x34b   :  { %2373 = vmatpush.msrb.mxu0 %v3880_v38  ;;  %2432 = vmatpush.msrb.mxu1 %v3892_v54 }
 0x34c   :  { %2335 = vmatpush.msra.mxu3 %v2334_v34 }
 0x34d   :  { %2376 = vmatpush.msrb.mxu0 %v3884_v60  ;;  %2434 = vmatpush.msrb.mxu1 %v3913_v29 }
 0x34e   :  { %2162 = vmatmul.f32.vlgmr.msra.gmra.mxu0 %v1894_v28  ;;  %v4016_v28 = vand.u32 4294901760, %v2206_v39  ;;  %2341 = vmatpush.msra.mxu3 %v2340_v63 }
 0x34f   :  { %2379 = vmatpush.msrb.mxu0 %v3887_v16  ;;  %2436 = vmatpush.msrb.mxu1 %v3928_v51 }
 0x350   :  { %v2349_v21 = vsub.f32 %v2206_v39, %v4016_v28  ;;  %2252 = vmatpush.msra.mxu2 %v4016_v28  ;;  %2347 = vmatpush.msra.mxu3 %v2346_v41 }
 0x351   :  { %2382 = vmatpush.msrb.mxu0 %v3890_v53  ;;  %2438 = vmatpush.msrb.mxu1 %v3930_v56 }
 0x352   :  { %v2350_v7 = vand.u32 4294901760, %v2349_v21  ;;  %2254 = vmatpush.msra.mxu2 %v2253_v50 }
 0x353   :  { %2385 = vmatpush.msrb.mxu0 %v3901_v18  ;;  %2440 = vmatpush.msrb.mxu1 %v3932_v59 }
 0x354   :  { %v2351_v11 = vsub.f32 %v2349_v21, %v2350_v7  ;;  %2461 = vmatpush.msrb.mxu2 %v2266_v49 }
 0x355   :  { %2388 = vmatpush.msrb.mxu0 %v3921_v48  ;;  %2442 = vmatpush.msrb.mxu1 %v3998_v15 }
 0x356   :  { %v2352_v46 = vand.u32 4294901760, %v2351_v11  ;;  %2465 = vmatpush.msrb.mxu2 %v2272_v8 }
 0x357   :  { %2391 = vmatpush.msrb.mxu0 %v3942_v52  ;;  %2444 = vmatpush.msrb.mxu1 %v4003_v0 }
 0x358   :  { %2353 = vmatpush.msra.mxu3 %v2352_v46  ;;  %2469 = vmatpush.msrb.mxu2 %v2278_v42 }
 0x359   :  { %2394 = vmatpush.msrb.mxu0 %v3946_v2  ;;  %2446 = vmatpush.msrb.mxu1 %v4009_v20 }
 0x35a   :  { %2473 = vmatpush.msrb.mxu2 %v2284_v5  ;;  %2359 = vmatpush.msra.mxu3 %v2358_v23 }
 0x35b   :  { %2397 = vmatpush.msrb.mxu0 %v3955_v43  ;;  %2448 = vmatpush.msrb.mxu1 %v4016_v28 }
 0x35c   :  { %2528 = vmatpush.msrb.mxu3 %v3861_v26  ;;  %2477 = vmatpush.msrb.mxu2 %v2290_v17  ;;  %v2597_v26 = vld [vmem:[#allocation9 + $0x5] ss:$0 sm:$0xff] }
 0x35d   :  { %2400 = vmatpush.msrb.mxu0 %v4001_v22  ;;  %2450 = vmatpush.msrb.mxu1 %v2253_v50 }
 0x35e   :  { %2530 = vmatpush.msrb.mxu3 %v3863_v27  ;;  %2481 = vmatpush.msrb.mxu2 %v2296_v61  ;;  %v2598_v61 = vld [vmem:[#allocation9 + $0x6] ss:$0 sm:$0xff] }
 0x35f   :  { %2403 = vmatpush.msrb.mxu0 %v2337_v37 }
 0x360   :  { %2532 = vmatpush.msrb.mxu3 %v3865_v10  ;;  %2485 = vmatpush.msrb.mxu2 %v2302_v24 }
 0x361   :  { %2406 = vmatpush.msrb.mxu0 %v2343_v1 }
 0x362   :  { %2534 = vmatpush.msrb.mxu3 %v3867_v12  ;;  %2489 = vmatpush.msrb.mxu2 %v2308_v9 }
 0x363   :  { %2409 = vmatpush.msrb.mxu0 %v2349_v21 }
 0x364   :  { %2536 = vmatpush.msrb.mxu3 %v3869_v31  ;;  %2493 = vmatpush.msrb.mxu2 %v2314_v30 }
 0x365   :  { %2412 = vmatpush.msrb.mxu0 %v2355_v44 }
 0x366   :  { %2538 = vmatpush.msrb.mxu3 %v3871_v32  ;;  %2497 = vmatpush.msrb.mxu2 %v2320_v55 }
 0x368   :  { %2540 = vmatpush.msrb.mxu3 %v3892_v54  ;;  %2501 = vmatpush.msrb.mxu2 %v2326_v33 }
 0x36a   :  { %2542 = vmatpush.msrb.mxu3 %v3913_v29  ;;  %2505 = vmatpush.msrb.mxu2 %v2332_v35 }
 0x36c   :  { %2544 = vmatpush.msrb.mxu3 %v3928_v51  ;;  %2509 = vmatpush.msrb.mxu2 %v2338_v57 }
 0x36e   :  { %2546 = vmatpush.msrb.mxu3 %v3930_v56  ;;  %2513 = vmatpush.msrb.mxu2 %v2344_v19 }
 0x370   :  { %2548 = vmatpush.msrb.mxu3 %v3932_v59  ;;  %2517 = vmatpush.msrb.mxu2 %v2350_v7 }
 0x372   :  { %2550 = vmatpush.msrb.mxu3 %v3998_v15  ;;  %2521 = vmatpush.msrb.mxu2 %v2356_v40 }
 0x374   :  { %2552 = vmatpush.msrb.mxu3 %v4003_v0 }
 0x376   :  { %2554 = vmatpush.msrb.mxu3 %v4009_v20 }
 0x378   :  { %2556 = vmatpush.msrb.mxu3 %v4016_v28 }
 0x37a   :  { %2558 = vmatpush.msrb.mxu3 %v2253_v50 }
 0x3bb   :  { %v2001_v27 = vpop.f32.mrf.mxu1 }
 0x3c3   :  { %v1900_v10 = vpop.f32.mrf.mxu0  ;;  %v2055_v32 = vpop.f32.mrf.mxu2 }
 0x3c4   :  { %v1901_v12 = vadd.f32 %v2597_v26, %v1900_v10  ;;  %v2200_v53 = vpop.f32.mrf.mxu1 }
 0x3c5   :  { %v2094_v58 = vpop.f32.mrf.mxu3 }
 0x3c6   :  { %v2002_v31 = vadd.f32 %v2001_v27, %v1901_v12 }
 0x3c8   :  { %v2056_v36 = vadd.f32 %v2055_v32, %v2002_v31 }
 0x3ca   :  { %v2095_v38 = vadd.f32 %v2094_v58, %v2056_v36 }
 0x3cb   :  { %v2163_v60 = vpop.f32.mrf.mxu0 }
 0x3cc   :  { %v2164_v16 = vadd.f32 %v2163_v60, %v2095_v38 }
 0x3ce   :  { %v2201_v54 = vadd.f32 %v2200_v53, %v2164_v16 }
 0x3d0   :  { %2607 = vtanh.f32 %v2201_v54 }
 0x3d6   :  { %v2608_v49 = vpop.eup %2607 }
 0x3d7   :  { %v2204_v8 = vadd.f32 %v2608_v49, %v3935_v4 }
 0x3d9   :  { %v2255_v42 = vand.u32 4294901760, %v2204_v8 }
 0x3db   :  { %2361 = vmatmul.f32.vlgmr.msra.gmra.mxu3 %v2255_v42  ;;  %v2256_v5 = vsub.f32 %v2204_v8, %v2255_v42 }
 0x3dd   :  { %2415 = vmatmul.f32.vlgmr.msrb.gmra.mxu0 %v2256_v5  ;;  %v2257_v17 = vand.u32 4294901760, %v2256_v5 }
 0x3df   :  { %2454 = vmatmul.f32.vlgmr.msrb.gmra.mxu1 %v2257_v17  ;;  %v2258_v18 = vsub.f32 %v2256_v5, %v2257_v17 }
 0x3e1   :  { %v2259_v29 = vand.u32 4294901760, %v2258_v18 }
 0x3e3   :  { %2260 = vmatmul.f32.vlgmr.msra.gmra.mxu2 %v2259_v29  ;;  %2560 = vmatmul.f32.vlgmr.msrb.gmra.mxu3 %v2255_v42 }
 0x3eb   :  { %2523 = vmatmul.f32.vlgmr.msrb.gmra.mxu2 %v2255_v42 }
 0x45a   :  { %v2416_v59 = vpop.f32.mrf.mxu0 }
 0x45c   :  { %v2455_v52 = vpop.f32.mrf.mxu1 }
 0x45e   :  { %v2362_v48 = vpop.f32.mrf.mxu3 }
 0x466   :  { %v2261_v24 = vpop.f32.mrf.mxu2  ;;  %v2561_v43 = vpop.f32.mrf.mxu3 }
 0x467   :  { %v2262_v51 = vadd.f32 %v2598_v61, %v2261_v24 }
 0x469   :  { %v2363_v56 = vadd.f32 %v2362_v48, %v2262_v51 }
 0x46b   :  { %v2417_v9 = vadd.f32 %v2416_v59, %v2363_v56 }
 0x46d   :  { %v2456_v4 = vadd.f32 %v2455_v52, %v2417_v9 }
 0x46e   :  { %v2524_v2 = vpop.f32.mrf.mxu2 }
 0x46f   :  { %v2525_v30 = vadd.f32 %v2524_v2, %v2456_v4 }
 0x471   :  { %v2562_v55 = vadd.f32 %v2561_v43, %v2525_v30 }
 0x473   :  { %2564 = vst [vmem:[#allocation11] sm:$0xff] %v2562_v55 }
 0x474   :  { %2575 = dma.vmem_to_hbm [thread:$0]  %s2571_s3, 128, %s2573_s11, [#allocation5]  }
 0x475   :  { %2735 = dma.done.wait [#allocation5], 128  }
 0x476   :  { %2736 = vsyncadd [#allocation5], 4294967168 }
 0x477   :  { %2580 = vsyncpa [#allocation4], 1 }
 0x478   :  { %2581 = vsyncpa [#allocation7], 1 }
 0x479   :  { %2582 = vsyncpa [#allocation10], 1 }
 0x47a   :  { %2583 = vsyncpa [#allocation5], 1 }

</bundles_post_ra>
